<compile_context>
chip_gen: v5e
topology: v5e:2x2
jax: 0.10.0
libtpu: 0.0.40
codegen_flags: <defaults>
</compile_context>

<pallas_src>
import jax
import jax.numpy as jnp
from jax.experimental import pallas as pl
from jax.experimental.pallas import tpu as pltpu


def _round_up(n, m):
    return ((n + m - 1) // m) * m


# ----------------------------------------------------------------------------
# Kernel body: one batch tile, both layers fused.
# ----------------------------------------------------------------------------
def _mlp_kernel(x_ref, w1_ref, b1_ref, w2_ref, b2_ref, o_ref):
    # Cast the streamed f32 x tile to the MXU compute dtype in-kernel (VPU work,
    # hidden under the x DMA / MXU on all generations).
    x = x_ref[...].astype(w1_ref.dtype)
    # Layer 1 on the MXU, f32 accumulation.
    h = jnp.dot(x, w1_ref[...], preferred_element_type=jnp.float32)
    # Bias + ReLU in f32 on the VPU (v5e has no bf16 VPU path).
    h = jnp.maximum(h + b1_ref[...], 0.0)
    # Layer 2: bf16 MXU matmul, f32 accumulation, f32 bias.
    out = jnp.dot(h.astype(w2_ref.dtype), w2_ref[...],
                  preferred_element_type=jnp.float32) + b2_ref[...]
    o_ref[...] = out.astype(o_ref.dtype)


# ----------------------------------------------------------------------------
# Chip-aware tiling helpers.
# ----------------------------------------------------------------------------
def _chip_hints():
    """Best-effort (vmem_bytes_per_core, tensorcores_per_chip). Conservative fallback."""
    vmem = None
    cores = None
    try:
        info = pltpu.get_tpu_info()
        v = getattr(info, "vmem_capacity_bytes", None)
        if isinstance(v, int) and v > 0:
            vmem = v
        for attr in ("num_tensorcores", "tensorcores_per_chip", "num_cores"):
            c = getattr(info, attr, None)
            if isinstance(c, int) and c > 0:
                cores = c
                break
    except Exception:
        pass
    if vmem is None:
        vmem = 64 << 20                       # assume smallest (v7x) if unknown
    if cores is None:
        cores = 2 if vmem <= (80 << 20) else 1  # v7x proxy: 64 MiB/TC, 2 TCs
    return vmem, cores


def _vmem_bytes_estimate(bm, K, H, O, x_itemsize, w_itemsize):
    x_buf = 2 * bm * K * x_itemsize                     # double-buffered x tile (f32)
    w_buf = 2 * (K * H * w_itemsize + H * 4 + H * O * w_itemsize + O * 4)
    out_buf = 2 * bm * O * 4
    scratch = 3 * bm * H * 4                            # h (f32) + relu + bf16-cast temps
    return x_buf + w_buf + out_buf + scratch + (4 << 20)  # + headroom


# ----------------------------------------------------------------------------
# Public forward.
# ----------------------------------------------------------------------------
def prepare_params(w1, b1, w2, b2, compute_dtype=jnp.bfloat16):
    """One-time (out-of-hot-path) cast of the weights to the MXU compute dtype."""
    return (w1.astype(compute_dtype), b1.astype(jnp.float32),
            w2.astype(compute_dtype), b2.astype(jnp.float32))


def finetune_nn_forward(x, w1, b1, w2, b2, *, bm=None, compute_dtype=jnp.bfloat16):
    """Fused 2-layer MLP forward on TPU via Pallas.

    x:  (B, 2048) float32
    w1: (2048, 256)  (transposed PyTorch weight, (in, out)); f32 or bf16
    b1: (256,)
    w2: (256, 2)     (transposed PyTorch weight); f32 or bf16
    b2: (2,)
    returns (B, 2) float32
    """
    B, K = x.shape
    H = w1.shape[1]
    O = w2.shape[1]
    assert w1.shape == (K, H) and b1.shape == (H,)
    assert w2.shape == (H, O) and b2.shape == (O,)

    vmem_phys, n_cores = _chip_hints()
    # Explicit scoped-VMEM budget (also used to cap the tile):
    #   v5e/v6e (128 MiB physical) -> 56 MiB, v7x (64 MiB physical) -> 40 MiB.
    vmem_budget = int(max(32 << 20, min(56 << 20, vmem_phys // 2 + (8 << 20))))

    x_itemsize = jnp.dtype(x.dtype).itemsize
    w_itemsize = jnp.dtype(compute_dtype).itemsize

    # --- batch tile: largest multiple of 16 that fits the VMEM budget ---------
    bm_req = bm if bm is not None else 2048
    bm = max(16, (min(bm_req, _round_up(B, 16)) // 16) * 16)
    while bm > 16 and _vmem_bytes_estimate(bm, K, H, O, x_itemsize, w_itemsize) > vmem_budget:
        bm = max(16, ((bm // 2) // 16) * 16)

    Bp = _round_up(B, bm)
    # Only on a multi-TensorCore chip (v7x): if the whole batch is one tile,
    # split it so both cores get work under "parallel" semantics.
    if n_cores > 1 and Bp == bm and bm % 32 == 0:
        bm //= 2
    assert bm % 16 == 0 and Bp % bm == 0
    grid = (Bp // bm,)

    if Bp != B:
        x = jnp.pad(x, ((0, Bp - B), (0, 0)))

    # Weights/biases: cast only if needed (no-op when already prepared in bf16).
    w1_c = w1 if w1.dtype == compute_dtype else w1.astype(compute_dtype)
    w2_c = w2 if w2.dtype == compute_dtype else w2.astype(compute_dtype)
    b1_2d = b1.reshape(1, H).astype(jnp.float32)   # biases stay f32
    b2_2d = b2.reshape(1, O).astype(jnp.float32)

    # ---- advisory cost hint for the surrounding XLA graph --------------------
    flops = 2 * Bp * K * H + 2 * Bp * H * O
    bytes_accessed = (Bp * K * x_itemsize                      # f32 x streamed from HBM
                      + K * H * w_itemsize + H * O * w_itemsize
                      + (H + O) * 4
                      + Bp * O * 4)                            # f32 output
    cost = pl.CostEstimate(flops=flops, transcendentals=0,
                           bytes_accessed=bytes_accessed)

    out = pl.pallas_call(
        _mlp_kernel,
        out_shape=jax.ShapeDtypeStruct((Bp, O), jnp.float32),
        grid_spec=pltpu.PrefetchScalarGridSpec(
            num_scalar_prefetch=0,
            grid=grid,
            in_specs=[
                pl.BlockSpec((bm, K), lambda i: (i, 0)),   # streamed f32 x tile
                pl.BlockSpec((K, H), lambda i: (0, 0)),    # W1 (VMEM resident, bf16)
                pl.BlockSpec((1, H), lambda i: (0, 0)),    # b1 (f32)
                pl.BlockSpec((H, O), lambda i: (0, 0)),    # W2 (bf16)
                pl.BlockSpec((1, O), lambda i: (0, 0)),    # b2 (f32)
            ],
            out_specs=pl.BlockSpec((bm, O), lambda i: (i, 0)),
        ),
        compiler_params=pltpu.CompilerParams(
            dimension_semantics=("parallel",),
            vmem_limit_bytes=vmem_budget,
        ),
        cost_estimate=cost,
    )(x, w1_c, b1_2d, w2_c, b2_2d)

    return out[:B]


def _init_params(key):
    """Deterministic init mirroring PyTorch nn.Linear U(-1/sqrt(fan_in), 1/sqrt(fan_in))."""
    k1, k2, k3, k4 = jax.random.split(key, 4)
    in1, out1 = 2048, 256
    in2, out2 = 256, 2
    s1 = 1.0 / jnp.sqrt(jnp.float32(in1))
    s2 = 1.0 / jnp.sqrt(jnp.float32(in2))
    # stored already transposed: (in, out)
    w1 = jax.random.uniform(k1, (in1, out1), jnp.float32, -s1, s1)
    b1 = jax.random.uniform(k2, (out1,), jnp.float32, -s1, s1)
    w2 = jax.random.uniform(k3, (in2, out2), jnp.float32, -s2, s2)
    b2 = jax.random.uniform(k4, (out2,), jnp.float32, -s2, s2)
    return w1, b1, w2, b2


if __name__ == "__main__":
    key = jax.random.PRNGKey(0)
    k_params, k_x = jax.random.split(key)

    w1, b1, w2, b2 = _init_params(k_params)
    # One-time bf16 cast of the weights, outside the hot path.
    w1_c, b1_c, w2_c, b2_c = prepare_params(w1, b1, w2, b2)

    B = 8
    x = jax.random.normal(k_x, (B, 2048), jnp.float32)

    out = jax.block_until_ready(finetune_nn_forward(x, w1_c, b1_c, w2_c, b2_c))
    assert out.shape == (B, 2)

    # Reference using the same bf16 weights / in-kernel bf16 x cast / f32 accumulation.
    xb = x.astype(jnp.bfloat16)
    h_ref = jnp.maximum(
        jnp.dot(xb, w1_c, preferred_element_type=jnp.float32) + b1, 0.0)
    ref_bf16 = jnp.dot(h_ref.astype(jnp.bfloat16), w2_c,
                       preferred_element_type=jnp.float32) + b2
    assert jnp.allclose(out, ref_bf16, atol=1e-2, rtol=1e-2)

    # Sanity check vs. the full-f32 PyTorch math (looser tolerance for bf16 compute).
    ref_f32 = jnp.maximum(x @ w1 + b1, 0.0) @ w2 + b2
    assert jnp.allclose(out, ref_f32, atol=5e-2, rtol=5e-2)

    print("KERNEL_OK")
</pallas_src>

<mosaic_0001>
module attributes {stable_mosaic.version = 11 : i64} {
  func.func @_mlp_kernel(%arg0: i32, %arg1: memref<16x2048xf32, #tpu.memory_space<vmem>>, %arg2: memref<2048x256xbf16, #tpu.memory_space<vmem>>, %arg3: memref<1x256xf32, #tpu.memory_space<vmem>>, %arg4: memref<256x2xbf16, #tpu.memory_space<vmem>>, %arg5: memref<1x2xf32, #tpu.memory_space<vmem>>, %arg6: memref<16x2xf32, #tpu.memory_space<vmem>>) attributes {dimension_semantics = [#tpu.dimension_semantics<parallel>], iteration_bounds = array<i64: 1>, scalar_prefetch = 0 : i64, scratch_operands = 0 : i64, tpu.core_type = #tpu.core_type<tc>, window_params = [{transform_indices = @transform_0, window_bounds = array<i64: 16, 2048>}, {pipeline_mode = #tpu.pipeline_mode<synchronous>, transform_indices = @transform_1, window_bounds = array<i64: 2048, 256>}, {pipeline_mode = #tpu.pipeline_mode<synchronous>, transform_indices = @transform_2, window_bounds = array<i64: 1, 256>}, {pipeline_mode = #tpu.pipeline_mode<synchronous>, transform_indices = @transform_3, window_bounds = array<i64: 256, 2>}, {pipeline_mode = #tpu.pipeline_mode<synchronous>, transform_indices = @transform_4, window_bounds = array<i64: 1, 2>}, {transform_indices = @transform_5, window_bounds = array<i64: 16, 2>}]} {
    %c0 = arith.constant 0 : index
    %c0_0 = arith.constant 0 : index
    %0 = vector.load %arg1[%c0, %c0_0] : memref<16x2048xf32, #tpu.memory_space<vmem>>, vector<16x2048xf32>
    %1 = arith.truncf %0 : vector<16x2048xf32> to vector<16x2048xbf16>
    %c0_1 = arith.constant 0 : index
    %c0_2 = arith.constant 0 : index
    %2 = vector.load %arg2[%c0_1, %c0_2] : memref<2048x256xbf16, #tpu.memory_space<vmem>>, vector<2048x256xbf16>
    %cst = arith.constant dense<0.000000e+00> : vector<16x256xf32>
    %3 = tpu.matmul %1, %2, %cst {dimension_numbers = #tpu.dot_dimension_numbers<[1], [0], [0], [1], [0, 0, 1, 1], [], []>} : vector<16x2048xbf16>, vector<2048x256xbf16>, vector<16x256xf32> -> vector<16x256xf32>
    %c0_3 = arith.constant 0 : index
    %c0_4 = arith.constant 0 : index
    %4 = vector.load %arg3[%c0_3, %c0_4] : memref<1x256xf32, #tpu.memory_space<vmem>>, vector<1x256xf32>
    %5 = vector.broadcast %4 : vector<1x256xf32> to vector<16x256xf32>
    %6 = arith.addf %3, %5 : vector<16x256xf32>
    %cst_5 = arith.constant 0.000000e+00 : f32
    %7 = vector.broadcast %cst_5 : f32 to vector<16x256xf32>
    %8 = arith.maximumf %6, %7 : vector<16x256xf32>
    %9 = arith.truncf %8 : vector<16x256xf32> to vector<16x256xbf16>
    %c0_6 = arith.constant 0 : index
    %c0_7 = arith.constant 0 : index
    %10 = vector.load %arg4[%c0_6, %c0_7] : memref<256x2xbf16, #tpu.memory_space<vmem>>, vector<256x2xbf16>
    %cst_8 = arith.constant dense<0.000000e+00> : vector<16x2xf32>
    %11 = tpu.matmul %9, %10, %cst_8 {dimension_numbers = #tpu.dot_dimension_numbers<[1], [0], [0], [1], [0, 0, 1, 1], [], []>} : vector<16x256xbf16>, vector<256x2xbf16>, vector<16x2xf32> -> vector<16x2xf32>
    %c0_9 = arith.constant 0 : index
    %c0_10 = arith.constant 0 : index
    %12 = vector.load %arg5[%c0_9, %c0_10] : memref<1x2xf32, #tpu.memory_space<vmem>>, vector<1x2xf32>
    %13 = vector.broadcast %12 : vector<1x2xf32> to vector<16x2xf32>
    %14 = arith.addf %11, %13 : vector<16x2xf32>
    %c0_11 = arith.constant 0 : index
    %c0_12 = arith.constant 0 : index
    %15 = vector.load %arg6[%c0_11, %c0_12] : memref<16x2xf32, #tpu.memory_space<vmem>>, vector<16x2xf32>
    tpu.vector_store %arg6[%c0_11, %c0_12], %14 {strides = array<i32>} : memref<16x2xf32, #tpu.memory_space<vmem>>, vector<16x2xf32>,
    return
  }
  func.func @transform_0(%arg0: i32) -> (i32, i32) {
    %c0_i32 = arith.constant 0 : i32
    %c0_i32_0 = arith.constant 0 : i32
    return %arg0, %c0_i32 : i32, i32
  }
  func.func @transform_1(%arg0: i32) -> (i32, i32) {
    %c0_i32 = arith.constant 0 : i32
    %c0_i32_0 = arith.constant 0 : i32
    %c0_i32_1 = arith.constant 0 : i32
    return %c0_i32, %c0_i32_0 : i32, i32
  }
  func.func @transform_2(%arg0: i32) -> (i32, i32) {
    %c0_i32 = arith.constant 0 : i32
    %c0_i32_0 = arith.constant 0 : i32
    %c0_i32_1 = arith.constant 0 : i32
    return %c0_i32, %c0_i32_0 : i32, i32
  }
  func.func @transform_3(%arg0: i32) -> (i32, i32) {
    %c0_i32 = arith.constant 0 : i32
    %c0_i32_0 = arith.constant 0 : i32
    %c0_i32_1 = arith.constant 0 : i32
    return %c0_i32, %c0_i32_0 : i32, i32
  }
  func.func @transform_4(%arg0: i32) -> (i32, i32) {
    %c0_i32 = arith.constant 0 : i32
    %c0_i32_0 = arith.constant 0 : i32
    %c0_i32_1 = arith.constant 0 : i32
    return %c0_i32, %c0_i32_0 : i32, i32
  }
  func.func @transform_5(%arg0: i32) -> (i32, i32) {
    %c0_i32 = arith.constant 0 : i32
    %c0_i32_0 = arith.constant 0 : i32
    return %arg0, %c0_i32 : i32, i32
  }
}

</mosaic_0001>

<bundles_post_ra>
// kernel: tpu_custom_call.1
= control target key start
LH: loop header
LB: loop body
LE: loop exit
PB: predicated region body
PF: predicated region fallthrough
CT: control target
= control target key end

     0   :  { %10 = vsyncpa [#allocation3], 0  ;;  %s3891_s0 = inlined_call_operand.hbm [shape: f32[16,2048], index: 0, kind: input, shape index: {}]   ;;  %s3892_s1 = inlined_call_operand.hbm [shape: bf16[2048,256], index: 1, kind: input, shape index: {}]   ;;  %s3893_s2 = inlined_call_operand.vmem [shape: f32[1,256], index: 2, kind: input, shape index: {}]   ;;  %s3894_s3 = inlined_call_operand.vmem [shape: bf16[256,2], index: 3, kind: input, shape index: {}]   ;;  %s3895_s4 = inlined_call_operand.vmem [shape: f32[1,2], index: 4, kind: input, shape index: {}]   ;;  %s3896_s5 = inlined_call_operand.vmem [shape: f32[16,2], index: 5, kind: output, shape index: {}]  }
   0x1   :  { %s16_s20 = sshll.u32 %s3891_s0, 4  ;;  %s17_s20 = int_to_ptr.hbm [resolvable:$true] %s16_s20 }
   0x2   :  { %11 = vsyncpa [#allocation5], 0  ;;  %s3683_s21 = smov [#allocation2]   ;;  %s29_s25 = sshll.u32 %s3892_s1, 4  ;;  %s30_s25 = int_to_ptr.hbm [resolvable:$true] %s29_s25 }
   0x3   :  { %s18_s22 = sshll.u32 %s3683_s21, 4  ;;  %s3684_s26 = smov 2048   ;;  %s19_s22 = int_to_ptr.vmem [resolvable:$true] %s18_s22 }
   0x4   :  { %s3685_s27 = smov 128   ;;  %s3686_s28 = smov [#allocation4]  }
   0x5   :  { %24 = dma.hbm_to_vmem [thread:$0]  %s17_s20, 4096, %s19_s22, [#allocation3], %s3684_s26, %s3684_s26, %s3685_s27  }
   0x6   :  { %s31_s29 = sshll.u32 %s3686_s28, 4  ;;  %s3687_s30 = smov 8   ;;  %s32_s29 = int_to_ptr.vmem [resolvable:$true] %s31_s29 }
   0x7   :  { %37 = dma.hbm_to_vmem [thread:$0]  %s30_s25, 32768, %s32_s29, [#allocation5], %s3685_s27, %s3685_s27, %s3687_s30  }
   0x8   :  { %3679 = dma.done.wait [#allocation3], 4096  }
   0x9   :  { %3680 = vsyncadd [#allocation3], 4294963200 }
   0xa   :  { %3681 = dma.done.wait [#allocation5], 32768  }
   0xb   :  { %3682 = vsyncadd [#allocation5], 4294934528  ;;  %v2323_v0 = vld [vmem:[#allocation4 + $0x70] sm:$0xf]  ;;  %v3368_v1 = vld [vmem:[#allocation4 + $0x74] sm:$0xf0] }
   0xc   :  { %v2387_v2 = vld [vmem:[#allocation4 + $0xf0] sm:$0xf]  ;;  %v2324_v3 = vor.u32 %v3368_v1, %v2323_v0  ;;  %v3384_v4 = vld [vmem:[#allocation4 + $0xf4] sm:$0xf0]  ;;  %v2315_v11 = vld [vmem:[#allocation4 + $0x60] sm:$0xf] }
   0xd   :  { %v2451_v5 = vld [vmem:[#allocation4 + $0x170] sm:$0xf]  ;;  %v3400_v6 = vld [vmem:[#allocation4 + $0x174] sm:$0xf0]  ;;  %v2388_v7 = vor.u32 %v3384_v4, %v2387_v2  ;;  %v3366_v13 = vld [vmem:[#allocation4 + $0x64] sm:$0xf0] }
   0xe   :  { %v2452_v8 = vor.u32 %v3400_v6, %v2451_v5  ;;  %v2515_v9 = vld [vmem:[#allocation4 + $0x1f0] sm:$0xf]  ;;  %v3416_v10 = vld [vmem:[#allocation4 + $0x1f4] sm:$0xf0]  ;;  %1642 = vmatpush.bf16.msra.mxu0 %v2324_v3  ;;  %v2379_v14 = vld [vmem:[#allocation4 + $0xe0] sm:$0xf]  ;;  %v2316_v16 = vor.u32 %v3366_v13, %v2315_v11 }
   0xf   :  { %v2516_v12 = vor.u32 %v3416_v10, %v2515_v9  ;;  %v3382_v15 = vld [vmem:[#allocation4 + $0xe4] sm:$0xf0]  ;;  %1656 = vmatpush.bf16.msra.mxu1 %v2388_v7  ;;  %v2443_v18 = vld [vmem:[#allocation4 + $0x160] sm:$0xf]  ;;  %v2307_v23 = vld [vmem:[#allocation4 + $0x50] sm:$0xf] }
  0x10   :  { %1670 = vmatpush.bf16.msra.mxu2 %v2452_v8  ;;  %v2380_v17 = vor.u32 %v3382_v15, %v2379_v14  ;;  %v3398_v19 = vld [vmem:[#allocation4 + $0x164] sm:$0xf0]  ;;  %v2507_v20 = vld [vmem:[#allocation4 + $0x1e0] sm:$0xf]  ;;  %v3364_v24 = vld [vmem:[#allocation4 + $0x54] sm:$0xf0] }
  0x11   :  { %1684 = vmatpush.bf16.msra.mxu3 %v2516_v12  ;;  %v2444_v21 = vor.u32 %v3398_v19, %v2443_v18  ;;  %v3414_v22 = vld [vmem:[#allocation4 + $0x1e4] sm:$0xf0]  ;;  %v2371_v26 = vld [vmem:[#allocation4 + $0xd0] sm:$0xf]  ;;  %v3380_v27 = vld [vmem:[#allocation4 + $0xd4] sm:$0xf0]  ;;  %v2308_v29 = vor.u32 %v3364_v24, %v2307_v23 }
  0x12   :  { %v2508_v25 = vor.u32 %v3414_v22, %v2507_v20  ;;  %v2435_v28 = vld [vmem:[#allocation4 + $0x150] sm:$0xf]  ;;  %1643 = vmatpush.bf16.msra.mxu0 %v2316_v16  ;;  %v3396_v30 = vld [vmem:[#allocation4 + $0x154] sm:$0xf0]  ;;  %v2372_v33 = vor.u32 %v3380_v27, %v2371_v26  ;;  %v2299_v35 = vld [vmem:[#allocation4 + $0x40] sm:$0xf] }
  0x13   :  { %v2499_v31 = vld [vmem:[#allocation4 + $0x1d0] sm:$0xf]  ;;  %v3412_v32 = vld [vmem:[#allocation4 + $0x1d4] sm:$0xf0]  ;;  %1657 = vmatpush.bf16.msra.mxu1 %v2380_v17  ;;  %v2436_v34 = vor.u32 %v3396_v30, %v2435_v28  ;;  %v3362_v36 = vld [vmem:[#allocation4 + $0x44] sm:$0xf0] }
  0x14   :  { %1671 = vmatpush.bf16.msra.mxu2 %v2444_v21  ;;  %v2363_v37 = vld [vmem:[#allocation4 + $0xc0] sm:$0xf]  ;;  %v2500_v38 = vor.u32 %v3412_v32, %v2499_v31  ;;  %v3378_v39 = vld [vmem:[#allocation4 + $0xc4] sm:$0xf0]  ;;  %v2300_v44 = vor.u32 %v3362_v36, %v2299_v35  ;;  %v2291_v47 = vld [vmem:[#allocation4 + $0x30] sm:$0xf] }
  0x15   :  { %1685 = vmatpush.bf16.msra.mxu3 %v2508_v25  ;;  %v2427_v40 = vld [vmem:[#allocation4 + $0x140] sm:$0xf]  ;;  %v3394_v41 = vld [vmem:[#allocation4 + $0x144] sm:$0xf0]  ;;  %v2364_v45 = vor.u32 %v3378_v39, %v2363_v37  ;;  %v3360_v48 = vld [vmem:[#allocation4 + $0x34] sm:$0xf0] }
  0x16   :  { %v2491_v42 = vld [vmem:[#allocation4 + $0x1c0] sm:$0xf]  ;;  %v3410_v43 = vld [vmem:[#allocation4 + $0x1c4] sm:$0xf0]  ;;  %1644 = vmatpush.bf16.msra.mxu0 %v2308_v29  ;;  %v2428_v46 = vor.u32 %v3394_v41, %v2427_v40  ;;  %v2355_v49 = vld [vmem:[#allocation4 + $0xb0] sm:$0xf]  ;;  %v2292_v56 = vor.u32 %v3360_v48, %v2291_v47 }
  0x17   :  { %1658 = vmatpush.bf16.msra.mxu1 %v2372_v33  ;;  %v2492_v50 = vor.u32 %v3410_v43, %v2491_v42  ;;  %v3376_v51 = vld [vmem:[#allocation4 + $0xb4] sm:$0xf0]  ;;  %v2419_v52 = vld [vmem:[#allocation4 + $0x130] sm:$0xf]  ;;  %v2283_v59 = vld [vmem:[#allocation4 + $0x20] sm:$0xf] }
  0x18   :  { %1672 = vmatpush.bf16.msra.mxu2 %v2436_v34  ;;  %v3392_v53 = vld [vmem:[#allocation4 + $0x134] sm:$0xf0]  ;;  %v2483_v54 = vld [vmem:[#allocation4 + $0x1b0] sm:$0xf]  ;;  %v2356_v57 = vor.u32 %v3376_v51, %v2355_v49  ;;  %v3358_v60 = vld [vmem:[#allocation4 + $0x24] sm:$0xf0] }
  0x19   :  { %1686 = vmatpush.bf16.msra.mxu3 %v2500_v38  ;;  %v3408_v55 = vld [vmem:[#allocation4 + $0x1b4] sm:$0xf0]  ;;  %v2420_v58 = vor.u32 %v3392_v53, %v2419_v52  ;;  %v2347_v61 = vld [vmem:[#allocation4 + $0xa0] sm:$0xf]  ;;  %v3374_v63 = vld [vmem:[#allocation4 + $0xa4] sm:$0xf0]  ;;  %v2284_v4 = vor.u32 %v3358_v60, %v2283_v59 }
  0x1a   :  { %1645 = vmatpush.bf16.msra.mxu0 %v2300_v44  ;;  %v2484_v62 = vor.u32 %v3408_v55, %v2483_v54  ;;  %v2411_v0 = vld [vmem:[#allocation4 + $0x120] sm:$0xf]  ;;  %v3390_v1 = vld [vmem:[#allocation4 + $0x124] sm:$0xf0]  ;;  %v2348_v5 = vor.u32 %v3374_v63, %v2347_v61  ;;  %v2275_v7 = vld [vmem:[#allocation4 + $0x10] sm:$0xf] }
  0x1b   :  { %1659 = vmatpush.bf16.msra.mxu1 %v2364_v45  ;;  %v2475_v2 = vld [vmem:[#allocation4 + $0x1a0] sm:$0xf]  ;;  %v3406_v3 = vld [vmem:[#allocation4 + $0x1a4] sm:$0xf0]  ;;  %v2412_v6 = vor.u32 %v3390_v1, %v2411_v0  ;;  %v3356_v8 = vld [vmem:[#allocation4 + $0x14] sm:$0xf0] }
  0x1c   :  { %1673 = vmatpush.bf16.msra.mxu2 %v2428_v46  ;;  %v2339_v9 = vld [vmem:[#allocation4 + $0x90] sm:$0xf]  ;;  %v2476_v10 = vor.u32 %v3406_v3, %v2475_v2  ;;  %v3372_v11 = vld [vmem:[#allocation4 + $0x94] sm:$0xf0]  ;;  %v2276_v16 = vor.u32 %v3356_v8, %v2275_v7  ;;  %v2267_v17 = vld [vmem:[#allocation4] sm:$0xf] }
  0x1d   :  { %1687 = vmatpush.bf16.msra.mxu3 %v2492_v50  ;;  %v2403_v12 = vld [vmem:[#allocation4 + $0x110] sm:$0xf]  ;;  %v3388_v13 = vld [vmem:[#allocation4 + $0x114] sm:$0xf0]  ;;  %v3354_v18 = vld [vmem:[#allocation4 + $0x4] sm:$0xf0]  ;;  %v2340_v19 = vor.u32 %v3372_v11, %v2339_v9 }
  0x1e   :  { %1646 = vmatpush.bf16.msra.mxu0 %v2292_v56  ;;  %v2467_v14 = vld [vmem:[#allocation4 + $0x190] sm:$0xf]  ;;  %v3404_v15 = vld [vmem:[#allocation4 + $0x194] sm:$0xf0]  ;;  %v2404_v20 = vor.u32 %v3388_v13, %v2403_v12  ;;  %v2331_v21 = vld [vmem:[#allocation4 + $0x80] sm:$0xf]  ;;  %v2268_v31 = vor.u32 %v3354_v18, %v2267_v17 }
  0x1f   :  { %1660 = vmatpush.bf16.msra.mxu1 %v2356_v57  ;;  %v3370_v22 = vld [vmem:[#allocation4 + $0x84] sm:$0xf0]  ;;  %v2395_v23 = vld [vmem:[#allocation4 + $0x100] sm:$0xf]  ;;  %v2468_v24 = vor.u32 %v3404_v15, %v2467_v14  ;;  %v2579_v28 = vld [vmem:[#allocation4 + $0x270] sm:$0xf] }
  0x20   :  { %1674 = vmatpush.bf16.msra.mxu2 %v2420_v58  ;;  %v3386_v25 = vld [vmem:[#allocation4 + $0x104] sm:$0xf0]  ;;  %v2459_v26 = vld [vmem:[#allocation4 + $0x180] sm:$0xf]  ;;  %v3432_v29 = vld [vmem:[#allocation4 + $0x274] sm:$0xf0]  ;;  %v2332_v35 = vor.u32 %v3370_v22, %v2331_v21 }
  0x21   :  { %1688 = vmatpush.bf16.msra.mxu3 %v2484_v62  ;;  %v3402_v27 = vld [vmem:[#allocation4 + $0x184] sm:$0xf0]  ;;  %v2643_v30 = vld [vmem:[#allocation4 + $0x2f0] sm:$0xf]  ;;  %v3448_v32 = vld [vmem:[#allocation4 + $0x2f4] sm:$0xf0]  ;;  %v2396_v36 = vor.u32 %v3386_v25, %v2395_v23  ;;  %v2580_v40 = vor.u32 %v3432_v29, %v2579_v28 }
  0x22   :  { %1647 = vmatpush.bf16.msra.mxu0 %v2284_v4  ;;  %v2707_v33 = vld [vmem:[#allocation4 + $0x370] sm:$0xf]  ;;  %v3464_v34 = vld [vmem:[#allocation4 + $0x374] sm:$0xf0]  ;;  %v2460_v39 = vor.u32 %v3402_v27, %v2459_v26  ;;  %v2571_v41 = vld [vmem:[#allocation4 + $0x260] sm:$0xf]  ;;  %v2644_v43 = vor.u32 %v3448_v32, %v2643_v30 }
  0x23   :  { %1661 = vmatpush.bf16.msra.mxu1 %v2348_v5  ;;  %v2771_v37 = vld [vmem:[#allocation4 + $0x3f0] sm:$0xf]  ;;  %v3480_v38 = vld [vmem:[#allocation4 + $0x3f4] sm:$0xf0]  ;;  %v3430_v42 = vld [vmem:[#allocation4 + $0x264] sm:$0xf0]  ;;  %v2708_v44 = vor.u32 %v3464_v34, %v2707_v33 }
  0x24   :  { %1675 = vmatpush.bf16.msra.mxu2 %v2412_v6  ;;  %v2635_v45 = vld [vmem:[#allocation4 + $0x2e0] sm:$0xf]  ;;  %v3446_v46 = vld [vmem:[#allocation4 + $0x2e4] sm:$0xf0]  ;;  %v2772_v48 = vor.u32 %v3480_v38, %v2771_v37  ;;  %v54_v54 = vld [vmem:[#allocation2 + $0x10] sm:$0xff]  ;;  %v2572_v55 = vor.u32 %v3430_v42, %v2571_v41  ;;  %vm2256_vm0 = vcmask 15360  }
  0x25   :  { %1689 = vmatpush.bf16.msra.mxu3 %v2476_v10  ;;  %v2699_v47 = vld [vmem:[#allocation4 + $0x360] sm:$0xf]  ;;  %v3462_v49 = vld [vmem:[#allocation4 + $0x364] sm:$0xf0]  ;;  %v2563_v56 = vld [vmem:[#allocation4 + $0x250] sm:$0xf]  ;;  %v2636_v60 = vor.u32 %v3446_v46, %v2635_v45 }
  0x26   :  { %1648 = vmatpush.bf16.msra.mxu0 %v2276_v16  ;;  %v2763_v50 = vld [vmem:[#allocation4 + $0x3e0] sm:$0xf]  ;;  %v3478_v51 = vld [vmem:[#allocation4 + $0x3e4] sm:$0xf0]  ;;  %v3428_v57 = vld [vmem:[#allocation4 + $0x254] sm:$0xf0]  ;;  %v2700_v61 = vor.u32 %v3462_v49, %v2699_v47 }
  0x27   :  { %1662 = vmatpush.bf16.msra.mxu1 %v2340_v19  ;;  %v52_v52 = vld [vmem:[#allocation2] sm:$0xff]  ;;  %v70_v59 = vld [vmem:[#allocation2 + $0x90] sm:$0xff]  ;;  %v3444_v63 = vld [vmem:[#allocation4 + $0x2d4] sm:$0xf0]  ;;  %v2764_v2 = vor.u32 %v3478_v51, %v2763_v50  ;;  %v2564_v9 = vor.u32 %v3428_v57, %v2563_v56 }
  0x28   :  { %1676 = vmatpush.bf16.msra.mxu2 %v2404_v20  ;;  %v68_v53 = vld [vmem:[#allocation2 + $0x80] sm:$0xff]  ;;  %v2627_v62 = vld [vmem:[#allocation4 + $0x2d0] sm:$0xf]  ;;  %v3726_v1 = vpack.c.bf16 %v70_v59, %v54_v54  ;;  %v3460_v3 = vld [vmem:[#allocation4 + $0x354] sm:$0xf0] }
  0x29   :  { %1690 = vmatpush.bf16.msra.mxu3 %v2468_v24  ;;  %v3724_v58 = vpack.c.bf16 %v68_v53, %v52_v52  ;;  %v2691_v0 = vld [vmem:[#allocation4 + $0x350] sm:$0xf]  ;;  %v3476_v5 = vld [vmem:[#allocation4 + $0x3d4] sm:$0xf0]  ;;  %v53_v6 = vld [vmem:[#allocation2 + $0x8] sm:$0xff]  ;;  %v2628_v12 = vor.u32 %v3444_v63, %v2627_v62 }
  0x2a   :  { %1649 = vmatpush.bf16.msra.mxu0 %v2268_v31  ;;  %v2755_v4 = vld [vmem:[#allocation4 + $0x3d0] sm:$0xf]  ;;  %v69_v7 = vld [vmem:[#allocation2 + $0x88] sm:$0xff]  ;;  %v55_v8 = vld [vmem:[#allocation2 + $0x18] sm:$0xff]  ;;  %v2692_v13 = vor.u32 %v3460_v3, %v2691_v0 }
  0x2b   :  { %1663 = vmatpush.bf16.msra.mxu1 %v2332_v35  ;;  %v3730_v10 = vpack.c.bf16 %v69_v7, %v53_v6  ;;  %v71_v11 = vld [vmem:[#allocation2 + $0x98] sm:$0xff]  ;;  %v2555_v14 = vld [vmem:[#allocation4 + $0x240] sm:$0xf]  ;;  %v3426_v15 = vld [vmem:[#allocation4 + $0x244] sm:$0xf0]  ;;  %v2756_v18 = vor.u32 %v3476_v5, %v2755_v4 }
  0x2c   :  { %1677 = vmatpush.bf16.msra.mxu2 %v2396_v36  ;;  %v2619_v16 = vld [vmem:[#allocation4 + $0x2c0] sm:$0xf]  ;;  %v3732_v17 = vpack.c.bf16 %v71_v11, %v55_v8  ;;  %v3442_v19 = vld [vmem:[#allocation4 + $0x2c4] sm:$0xf0]  ;;  %v2556_v24 = vor.u32 %v3426_v15, %v2555_v14  ;;  %v2547_v27 = vld [vmem:[#allocation4 + $0x230] sm:$0xf] }
  0x2d   :  { %1691 = vmatpush.bf16.msra.mxu3 %v2460_v39  ;;  %1650 = vmatmul.bf16.vlgmr.msra.gmra.mxu0 %v3724_v58  ;;  %v2683_v20 = vld [vmem:[#allocation4 + $0x340] sm:$0xf]  ;;  %v3458_v21 = vld [vmem:[#allocation4 + $0x344] sm:$0xf0]  ;;  %v2620_v25 = vor.u32 %v3442_v19, %v2619_v16  ;;  %v3424_v28 = vld [vmem:[#allocation4 + $0x234] sm:$0xf0] }
  0x2e   :  { %1698 = vmatpush.bf16.msrb.mxu0 %v2580_v40  ;;  %1664 = vmatmul.bf16.vlgmr.msra.gmra.mxu1 %v3730_v10  ;;  %v2747_v22 = vld [vmem:[#allocation4 + $0x3c0] sm:$0xf]  ;;  %v3474_v23 = vld [vmem:[#allocation4 + $0x3c4] sm:$0xf0]  ;;  %v2684_v26 = vor.u32 %v3458_v21, %v2683_v20  ;;  %v2611_v29 = vld [vmem:[#allocation4 + $0x2b0] sm:$0xf]  ;;  %v2548_v36 = vor.u32 %v3424_v28, %v2547_v27 }
  0x2f   :  { %1712 = vmatpush.bf16.msrb.mxu1 %v2644_v43  ;;  %1678 = vmatmul.bf16.vlgmr.msra.gmra.mxu2 %v3726_v1  ;;  %v2748_v30 = vor.u32 %v3474_v23, %v2747_v22  ;;  %v3440_v31 = vld [vmem:[#allocation4 + $0x2b4] sm:$0xf0]  ;;  %v2675_v32 = vld [vmem:[#allocation4 + $0x330] sm:$0xf]  ;;  %v2539_v39 = vld [vmem:[#allocation4 + $0x220] sm:$0xf] }
  0x30   :  { %1726 = vmatpush.bf16.msrb.mxu2 %v2708_v44  ;;  %1692 = vmatmul.bf16.vlgmr.msra.gmra.mxu3 %v3732_v17  ;;  %v3456_v33 = vld [vmem:[#allocation4 + $0x334] sm:$0xf0]  ;;  %v2739_v34 = vld [vmem:[#allocation4 + $0x3b0] sm:$0xf]  ;;  %v2612_v37 = vor.u32 %v3440_v31, %v2611_v29  ;;  %v3422_v40 = vld [vmem:[#allocation4 + $0x224] sm:$0xf0] }
  0x31   :  { %1740 = vmatpush.bf16.msrb.mxu3 %v2772_v48  ;;  %v3472_v35 = vld [vmem:[#allocation4 + $0x3b4] sm:$0xf0]  ;;  %v2676_v38 = vor.u32 %v3456_v33, %v2675_v32  ;;  %v2603_v41 = vld [vmem:[#allocation4 + $0x2a0] sm:$0xf]  ;;  %v3438_v43 = vld [vmem:[#allocation4 + $0x2a4] sm:$0xf0]  ;;  %v2540_v48 = vor.u32 %v3422_v40, %v2539_v39 }
  0x32   :  { %1699 = vmatpush.bf16.msrb.mxu0 %v2572_v55  ;;  %v2740_v42 = vor.u32 %v3472_v35, %v2739_v34  ;;  %v2667_v44 = vld [vmem:[#allocation4 + $0x320] sm:$0xf]  ;;  %v3454_v45 = vld [vmem:[#allocation4 + $0x324] sm:$0xf0]  ;;  %v2531_v49 = vld [vmem:[#allocation4 + $0x210] sm:$0xf]  ;;  %v2604_v50 = vor.u32 %v3438_v43, %v2603_v41 }
  0x33   :  { %1713 = vmatpush.bf16.msrb.mxu1 %v2636_v60  ;;  %v2731_v46 = vld [vmem:[#allocation4 + $0x3a0] sm:$0xf]  ;;  %v3470_v47 = vld [vmem:[#allocation4 + $0x3a4] sm:$0xf0]  ;;  %v2668_v51 = vor.u32 %v3454_v45, %v2667_v44  ;;  %v3420_v52 = vld [vmem:[#allocation4 + $0x214] sm:$0xf0] }
  0x34   :  { %1727 = vmatpush.bf16.msrb.mxu2 %v2700_v61  ;;  %v2595_v53 = vld [vmem:[#allocation4 + $0x290] sm:$0xf]  ;;  %v3436_v54 = vld [vmem:[#allocation4 + $0x294] sm:$0xf0]  ;;  %v2732_v55 = vor.u32 %v3470_v47, %v2731_v46  ;;  %v2523_v61 = vld [vmem:[#allocation4 + $0x200] sm:$0xf]  ;;  %v2532_v63 = vor.u32 %v3420_v52, %v2531_v49 }
  0x35   :  { %1741 = vmatpush.bf16.msrb.mxu3 %v2764_v2  ;;  %v2659_v56 = vld [vmem:[#allocation4 + $0x310] sm:$0xf]  ;;  %v3452_v57 = vld [vmem:[#allocation4 + $0x314] sm:$0xf0]  ;;  %v3418_v62 = vld [vmem:[#allocation4 + $0x204] sm:$0xf0]  ;;  %v2596_v5 = vor.u32 %v3436_v54, %v2595_v53 }
  0x36   :  { %1700 = vmatpush.bf16.msrb.mxu0 %v2564_v9  ;;  %v2723_v59 = vld [vmem:[#allocation4 + $0x390] sm:$0xf]  ;;  %v3468_v60 = vld [vmem:[#allocation4 + $0x394] sm:$0xf0]  ;;  %v2587_v0 = vld [vmem:[#allocation4 + $0x280] sm:$0xf]  ;;  %v2660_v6 = vor.u32 %v3452_v57, %v2659_v56  ;;  %v2524_v19 = vor.u32 %v3418_v62, %v2523_v61 }
  0x37   :  { %1714 = vmatpush.bf16.msrb.mxu1 %v2628_v12  ;;  %v3434_v2 = vld [vmem:[#allocation4 + $0x284] sm:$0xf0]  ;;  %v2651_v3 = vld [vmem:[#allocation4 + $0x300] sm:$0xf]  ;;  %v2835_v9 = vld [vmem:[#allocation4 + $0x470] sm:$0xf]  ;;  %v2724_v11 = vor.u32 %v3468_v60, %v2723_v59 }
  0x38   :  { %1728 = vmatpush.bf16.msrb.mxu2 %v2692_v13  ;;  %v3450_v4 = vld [vmem:[#allocation4 + $0x304] sm:$0xf0]  ;;  %v2715_v7 = vld [vmem:[#allocation4 + $0x380] sm:$0xf]  ;;  %v3496_v12 = vld [vmem:[#allocation4 + $0x474] sm:$0xf0]  ;;  %v2588_v23 = vor.u32 %v3434_v2, %v2587_v0 }
  0x39   :  { %1742 = vmatpush.bf16.msrb.mxu3 %v2756_v18  ;;  %v3466_v8 = vld [vmem:[#allocation4 + $0x384] sm:$0xf0]  ;;  %v2899_v13 = vld [vmem:[#allocation4 + $0x4f0] sm:$0xf]  ;;  %v3512_v14 = vld [vmem:[#allocation4 + $0x4f4] sm:$0xf0]  ;;  %v2836_v29 = vor.u32 %v3496_v12, %v2835_v9 }
  0x3a   :  { %1701 = vmatpush.bf16.msrb.mxu0 %v2556_v24  ;;  %v2963_v15 = vld [vmem:[#allocation4 + $0x570] sm:$0xf]  ;;  %v3528_v16 = vld [vmem:[#allocation4 + $0x574] sm:$0xf0]  ;;  %v56_v21 = vld [vmem:[#allocation2 + $0x20] sm:$0xff]  ;;  %v2652_v24 = vor.u32 %v3450_v4, %v2651_v3  ;;  %v2716_v28 = vor.u32 %v3466_v8, %v2715_v7  ;;  %v2900_v33 = vor.u32 %v3512_v14, %v2899_v13 }
  0x3b   :  { %1715 = vmatpush.bf16.msrb.mxu1 %v2620_v25  ;;  %v3027_v18 = vld [vmem:[#allocation4 + $0x5f0] sm:$0xf]  ;;  %v3544_v20 = vld [vmem:[#allocation4 + $0x5f4] sm:$0xf0]  ;;  %v72_v22 = vld [vmem:[#allocation2 + $0xa0] sm:$0xff]  ;;  %v2964_v34 = vor.u32 %v3528_v16, %v2963_v15 }
  0x3c   :  { %1729 = vmatpush.bf16.msrb.mxu2 %v2684_v26  ;;  %v58_v25 = vld [vmem:[#allocation2 + $0x30] sm:$0xff]  ;;  %v57_v27 = vld [vmem:[#allocation2 + $0x28] sm:$0xff]  ;;  %v59_v31 = vld [vmem:[#allocation2 + $0x38] sm:$0xff]  ;;  %v3736_v39 = vpack.c.bf16 %v72_v22, %v56_v21 }
  0x3d   :  { %1743 = vmatpush.bf16.msrb.mxu3 %v2748_v30  ;;  %v74_v26 = vld [vmem:[#allocation2 + $0xb0] sm:$0xff]  ;;  %v73_v30 = vld [vmem:[#allocation2 + $0xa8] sm:$0xff]  ;;  %v75_v32 = vld [vmem:[#allocation2 + $0xb8] sm:$0xff] }
  0x3e   :  { %1702 = vmatpush.bf16.msrb.mxu0 %v2548_v36  ;;  %v2827_v35 = vld [vmem:[#allocation4 + $0x460] sm:$0xf]  ;;  %v3494_v36 = vld [vmem:[#allocation4 + $0x464] sm:$0xf0]  ;;  %v3738_v43 = vpack.c.bf16 %v74_v26, %v58_v25  ;;  %v3740_v44 = vpack.c.bf16 %v73_v30, %v57_v27  ;;  %v3742_v47 = vpack.c.bf16 %v75_v32, %v59_v31  ;;  %v3492_v52 = vld [vmem:[#allocation4 + $0x454] sm:$0xf0] }
  0x3f   :  { %1716 = vmatpush.bf16.msrb.mxu1 %v2612_v37  ;;  %v2891_v37 = vld [vmem:[#allocation4 + $0x4e0] sm:$0xf]  ;;  %v3510_v40 = vld [vmem:[#allocation4 + $0x4e4] sm:$0xf0]  ;;  %v2883_v53 = vld [vmem:[#allocation4 + $0x4d0] sm:$0xf] }
  0x40   :  { %1730 = vmatpush.bf16.msrb.mxu2 %v2676_v38  ;;  %v3028_v38 = vor.u32 %v3544_v20, %v3027_v18  ;;  %v2955_v41 = vld [vmem:[#allocation4 + $0x560] sm:$0xf]  ;;  %v3542_v46 = vld [vmem:[#allocation4 + $0x5e4] sm:$0xf0]  ;;  %v2892_v49 = vor.u32 %v3510_v40, %v2891_v37  ;;  %v2947_v56 = vld [vmem:[#allocation4 + $0x550] sm:$0xf] }
  0x41   :  { %1744 = vmatpush.bf16.msrb.mxu3 %v2740_v42  ;;  %v3526_v42 = vld [vmem:[#allocation4 + $0x564] sm:$0xf0]  ;;  %v3019_v45 = vld [vmem:[#allocation4 + $0x5e0] sm:$0xf]  ;;  %v3524_v57 = vld [vmem:[#allocation4 + $0x554] sm:$0xf0] }
  0x42   :  { %1703 = vmatpush.bf16.msrb.mxu0 %v2540_v48  ;;  %v2828_v48 = vor.u32 %v3494_v36, %v2827_v35  ;;  %v3020_v54 = vor.u32 %v3542_v46, %v3019_v45  ;;  %v3011_v59 = vld [vmem:[#allocation4 + $0x5d0] sm:$0xf]  ;;  %v3540_v60 = vld [vmem:[#allocation4 + $0x5d4] sm:$0xf0]  ;;  %v2811_v0 = vld [vmem:[#allocation4 + $0x440] sm:$0xf] }
  0x43   :  { %1717 = vmatpush.bf16.msrb.mxu1 %v2604_v50  ;;  %v2956_v50 = vor.u32 %v3526_v42, %v2955_v41  ;;  %v3490_v2 = vld [vmem:[#allocation4 + $0x444] sm:$0xf0]  ;;  %v2875_v3 = vld [vmem:[#allocation4 + $0x4c0] sm:$0xf]  ;;  %v3012_v4 = vor.u32 %v3540_v60, %v3011_v59  ;;  %v2803_v14 = vld [vmem:[#allocation4 + $0x430] sm:$0xf] }
  0x44   :  { %1731 = vmatpush.bf16.msrb.mxu2 %v2668_v51  ;;  %v2819_v51 = vld [vmem:[#allocation4 + $0x450] sm:$0xf]  ;;  %v3522_v7 = vld [vmem:[#allocation4 + $0x544] sm:$0xf0]  ;;  %v3003_v8 = vld [vmem:[#allocation4 + $0x5c0] sm:$0xf] }
  0x45   :  { %1745 = vmatpush.bf16.msrb.mxu3 %v2732_v55  ;;  %v3508_v55 = vld [vmem:[#allocation4 + $0x4d4] sm:$0xf0]  ;;  %v2820_v61 = vor.u32 %v3492_v52, %v2819_v51  ;;  %v3538_v9 = vld [vmem:[#allocation4 + $0x5c4] sm:$0xf0]  ;;  %v2867_v16 = vld [vmem:[#allocation4 + $0x4b0] sm:$0xf] }
  0x46   :  { %1704 = vmatpush.bf16.msrb.mxu0 %v2532_v63  ;;  %v2884_v62 = vor.u32 %v3508_v55, %v2883_v53  ;;  %v2948_v63 = vor.u32 %v3524_v57, %v2947_v56  ;;  %v3488_v15 = vld [vmem:[#allocation4 + $0x434] sm:$0xf0]  ;;  %v3004_v18 = vor.u32 %v3538_v9, %v3003_v8  ;;  %v2931_v20 = vld [vmem:[#allocation4 + $0x530] sm:$0xf]  ;;  %v2795_v27 = vld [vmem:[#allocation4 + $0x420] sm:$0xf] }
  0x47   :  { %1718 = vmatpush.bf16.msrb.mxu1 %v2596_v5  ;;  %v3506_v5 = vld [vmem:[#allocation4 + $0x4c4] sm:$0xf0]  ;;  %v3520_v21 = vld [vmem:[#allocation4 + $0x534] sm:$0xf0]  ;;  %v2995_v22 = vld [vmem:[#allocation4 + $0x5b0] sm:$0xf] }
  0x48   :  { %1732 = vmatpush.bf16.msrb.mxu2 %v2660_v6  ;;  %v2939_v6 = vld [vmem:[#allocation4 + $0x540] sm:$0xf]  ;;  %v2876_v12 = vor.u32 %v3506_v5, %v2875_v3  ;;  %v2932_v26 = vor.u32 %v3520_v21, %v2931_v20  ;;  %v3502_v31 = vld [vmem:[#allocation4 + $0x4a4] sm:$0xf0]  ;;  %v2787_v37 = vld [vmem:[#allocation4 + $0x410] sm:$0xf] }
  0x49   :  { %1746 = vmatpush.bf16.msrb.mxu3 %v2724_v11  ;;  %v2812_v11 = vor.u32 %v3490_v2, %v2811_v0  ;;  %v2940_v13 = vor.u32 %v3522_v7, %v2939_v6  ;;  %v2923_v32 = vld [vmem:[#allocation4 + $0x520] sm:$0xf]  ;;  %v3534_v35 = vld [vmem:[#allocation4 + $0x5a4] sm:$0xf0]  ;;  %v3484_v41 = vld [vmem:[#allocation4 + $0x414] sm:$0xf0] }
  0x4a   :  { %1705 = vmatpush.bf16.msrb.mxu0 %v2524_v19  ;;  %v3504_v19 = vld [vmem:[#allocation4 + $0x4b4] sm:$0xf0]  ;;  %v2851_v42 = vld [vmem:[#allocation4 + $0x490] sm:$0xf]  ;;  %v2779_v52 = vld [vmem:[#allocation4 + $0x400] sm:$0xf] }
  0x4b   :  { %1719 = vmatpush.bf16.msrb.mxu1 %v2588_v23  ;;  %v3536_v23 = vld [vmem:[#allocation4 + $0x5b4] sm:$0xf0]  ;;  %v2868_v25 = vor.u32 %v3504_v19, %v2867_v16  ;;  %v3482_v53 = vld [vmem:[#allocation4 + $0x404] sm:$0xf0]  ;;  %v2843_v55 = vld [vmem:[#allocation4 + $0x480] sm:$0xf] }
  0x4c   :  { %1733 = vmatpush.bf16.msrb.mxu2 %v2652_v24  ;;  %v2804_v24 = vor.u32 %v3488_v15, %v2803_v14  ;;  %v2996_v30 = vor.u32 %v3536_v23, %v2995_v22  ;;  %v3500_v45 = vld [vmem:[#allocation4 + $0x494] sm:$0xf0]  ;;  %v3498_v56 = vld [vmem:[#allocation4 + $0x484] sm:$0xf0]  ;;  %v2907_v57 = vld [vmem:[#allocation4 + $0x500] sm:$0xf]  ;;  %v2780_v9 = vor.u32 %v3482_v53, %v2779_v52 }
  0x4d   :  { %1747 = vmatpush.bf16.msrb.mxu3 %v2716_v28  ;;  %1706 = vmatmul.bf16.vlgmr.msrb.gmra.mxu0 %v3736_v39  ;;  %v3486_v28 = vld [vmem:[#allocation4 + $0x424] sm:$0xf0]  ;;  %v3532_v51 = vld [vmem:[#allocation4 + $0x594] sm:$0xf0]  ;;  %v2852_v60 = vor.u32 %v3500_v45, %v2851_v42  ;;  %v3091_v0 = vld [vmem:[#allocation4 + $0x670] sm:$0xf]  ;;  %v2844_v14 = vor.u32 %v3498_v56, %v2843_v55 }
  0x4e   :  { %1754 = vmatpush.bf16.msra.mxu0 %v2836_v29  ;;  %1720 = vmatmul.bf16.vlgmr.msrb.gmra.mxu1 %v3740_v44  ;;  %v2859_v29 = vld [vmem:[#allocation4 + $0x4a0] sm:$0xf]  ;;  %v2796_v36 = vor.u32 %v3486_v28, %v2795_v27  ;;  %v3514_v59 = vld [vmem:[#allocation4 + $0x504] sm:$0xf0]  ;;  %v3560_v3 = vld [vmem:[#allocation4 + $0x674] sm:$0xf0] }
  0x4f   :  { %1768 = vmatpush.bf16.msra.mxu1 %v2900_v33  ;;  %1734 = vmatmul.bf16.vlgmr.msrb.gmra.mxu2 %v3738_v43  ;;  %v3518_v33 = vld [vmem:[#allocation4 + $0x524] sm:$0xf0]  ;;  %v3576_v5 = vld [vmem:[#allocation4 + $0x6f4] sm:$0xf0]  ;;  %v3219_v6 = vld [vmem:[#allocation4 + $0x770] sm:$0xf]  ;;  %v2908_v15 = vor.u32 %v3514_v59, %v2907_v57  ;;  %v3092_v21 = vor.u32 %v3560_v3, %v3091_v0 }
  0x50   :  { %1782 = vmatpush.bf16.msra.mxu2 %v2964_v34  ;;  %1748 = vmatmul.bf16.vlgmr.msrb.gmra.mxu3 %v3742_v47  ;;  %v2987_v34 = vld [vmem:[#allocation4 + $0x5a0] sm:$0xf]  ;;  %v2924_v40 = vor.u32 %v3518_v33, %v2923_v32  ;;  %v3592_v7 = vld [vmem:[#allocation4 + $0x774] sm:$0xf0]  ;;  %v3283_v8 = vld [vmem:[#allocation4 + $0x7f0] sm:$0xf] }
  0x51   :  { %1796 = vmatpush.bf16.msra.mxu3 %v3028_v38  ;;  %v2860_v38 = vor.u32 %v3502_v31, %v2859_v29  ;;  %v2988_v46 = vor.u32 %v3534_v35, %v2987_v34  ;;  %v62_v16 = vld [vmem:[#allocation2 + $0x50] sm:$0xff]  ;;  %v61_v19 = vld [vmem:[#allocation2 + $0x48] sm:$0xff]  ;;  %v63_v23 = vld [vmem:[#allocation2 + $0x58] sm:$0xff] }
  0x52   :  { %1755 = vmatpush.bf16.msra.mxu0 %v2828_v48  ;;  %v2915_v48 = vld [vmem:[#allocation4 + $0x510] sm:$0xf]  ;;  %v77_v22 = vld [vmem:[#allocation2 + $0xc8] sm:$0xff]  ;;  %v3083_v27 = vld [vmem:[#allocation4 + $0x660] sm:$0xf] }
  0x53   :  { %1769 = vmatpush.bf16.msra.mxu1 %v2892_v49  ;;  %v3516_v49 = vld [vmem:[#allocation4 + $0x514] sm:$0xf0]  ;;  %v3558_v28 = vld [vmem:[#allocation4 + $0x664] sm:$0xf0]  ;;  %v3147_v29 = vld [vmem:[#allocation4 + $0x6e0] sm:$0xf] }
  0x54   :  { %1783 = vmatpush.bf16.msra.mxu2 %v2956_v50  ;;  %v2979_v50 = vld [vmem:[#allocation4 + $0x590] sm:$0xf]  ;;  %v3574_v32 = vld [vmem:[#allocation4 + $0x6e4] sm:$0xf0]  ;;  %v3211_v33 = vld [vmem:[#allocation4 + $0x760] sm:$0xf] }
  0x55   :  { %1797 = vmatpush.bf16.msra.mxu3 %v3020_v54  ;;  %v2788_v54 = vor.u32 %v3484_v41, %v2787_v37  ;;  %v2980_v2 = vor.u32 %v3532_v51, %v2979_v50  ;;  %v3590_v34 = vld [vmem:[#allocation4 + $0x764] sm:$0xf0]  ;;  %v3275_v37 = vld [vmem:[#allocation4 + $0x7e0] sm:$0xf]  ;;  %v3084_v41 = vor.u32 %v3558_v28, %v3083_v27  ;;  %v3148_v42 = vor.u32 %v3574_v32, %v3147_v29  ;;  %v3572_v51 = vld [vmem:[#allocation4 + $0x6d4] sm:$0xf0] }
  0x56   :  { %1756 = vmatpush.bf16.msra.mxu0 %v2820_v61  ;;  %v2916_v61 = vor.u32 %v3516_v49, %v2915_v48  ;;  %v3212_v45 = vor.u32 %v3590_v34, %v3211_v33  ;;  %v3556_v48 = vld [vmem:[#allocation4 + $0x654] sm:$0xf0]  ;;  %v3139_v49 = vld [vmem:[#allocation4 + $0x6d0] sm:$0xf]  ;;  %v3570_v0 = vld [vmem:[#allocation4 + $0x6c4] sm:$0xf0] }
  0x57   :  { %1770 = vmatpush.bf16.msra.mxu1 %v2884_v62  ;;  %v2971_v62 = vld [vmem:[#allocation4 + $0x580] sm:$0xf]  ;;  %v3203_v52 = vld [vmem:[#allocation4 + $0x750] sm:$0xf]  ;;  %v3588_v53 = vld [vmem:[#allocation4 + $0x754] sm:$0xf0]  ;;  %v3140_v57 = vor.u32 %v3572_v51, %v3139_v49 }
  0x58   :  { %1784 = vmatpush.bf16.msra.mxu2 %v2948_v63  ;;  %v3530_v63 = vld [vmem:[#allocation4 + $0x584] sm:$0xf0]  ;;  %v3604_v55 = vld [vmem:[#allocation4 + $0x7d4] sm:$0xf0]  ;;  %v3204_v59 = vor.u32 %v3588_v53, %v3203_v52  ;;  %v3179_v28 = vld [vmem:[#allocation4 + $0x720] sm:$0xf] }
  0x59   :  { %1798 = vmatpush.bf16.msra.mxu3 %v3012_v4  ;;  %v3155_v4 = vld [vmem:[#allocation4 + $0x6f0] sm:$0xf]  ;;  %v2972_v20 = vor.u32 %v3530_v63, %v2971_v62  ;;  %v3131_v62 = vld [vmem:[#allocation4 + $0x6c0] sm:$0xf]  ;;  %v3586_v3 = vld [vmem:[#allocation4 + $0x744] sm:$0xf0] }
  0x5a   :  { %1757 = vmatpush.bf16.msra.mxu0 %v2812_v11  ;;  %v3608_v11 = vld [vmem:[#allocation4 + $0x7f4] sm:$0xf0]  ;;  %v3566_v27 = vld [vmem:[#allocation4 + $0x6a4] sm:$0xf0]  ;;  %v3043_v34 = vld [vmem:[#allocation4 + $0x610] sm:$0xf] }
  0x5b   :  { %1771 = vmatpush.bf16.msra.mxu1 %v2876_v12  ;;  %v60_v12 = vld [vmem:[#allocation2 + $0x40] sm:$0xff]  ;;  %v3582_v29 = vld [vmem:[#allocation4 + $0x724] sm:$0xf0]  ;;  %v3580_v49 = vld [vmem:[#allocation4 + $0x714] sm:$0xf0] }
  0x5c   :  { %1785 = vmatpush.bf16.msra.mxu2 %v2940_v13  ;;  %v76_v13 = vld [vmem:[#allocation2 + $0xc0] sm:$0xff]  ;;  %v3598_v32 = vld [vmem:[#allocation4 + $0x7a4] sm:$0xf0]  ;;  %v3596_v51 = vld [vmem:[#allocation4 + $0x794] sm:$0xf0] }
  0x5d   :  { %1799 = vmatpush.bf16.msra.mxu3 %v3004_v18  ;;  %v78_v18 = vld [vmem:[#allocation2 + $0xd0] sm:$0xff]  ;;  %v3748_v31 = vpack.c.bf16 %v76_v13, %v60_v12  ;;  %v3035_v52 = vld [vmem:[#allocation4 + $0x600] sm:$0xf]  ;;  %v3546_v53 = vld [vmem:[#allocation4 + $0x604] sm:$0xf0] }
  0x5e   :  { %1758 = vmatpush.bf16.msra.mxu0 %v2804_v24  ;;  %v79_v24 = vld [vmem:[#allocation2 + $0xd8] sm:$0xff]  ;;  %v3750_v35 = vpack.c.bf16 %v78_v18, %v62_v16  ;;  %v3123_v12 = vld [vmem:[#allocation4 + $0x6b0] sm:$0xf] }
  0x5f   :  { %1772 = vmatpush.bf16.msra.mxu1 %v2868_v25  ;;  %v3156_v25 = vor.u32 %v3576_v5, %v3155_v4  ;;  %v3259_v4 = vld [vmem:[#allocation4 + $0x7c0] sm:$0xf]  ;;  %v3602_v5 = vld [vmem:[#allocation4 + $0x7c4] sm:$0xf0]  ;;  %v3584_v16 = vld [vmem:[#allocation4 + $0x734] sm:$0xf0] }
  0x60   :  { %1786 = vmatpush.bf16.msra.mxu2 %v2932_v26  ;;  %v3220_v26 = vor.u32 %v3592_v7, %v3219_v6  ;;  %v3132_v7 = vor.u32 %v3570_v0, %v3131_v62  ;;  %v3260_v13 = vor.u32 %v3602_v5, %v3259_v4  ;;  %v3251_v18 = vld [vmem:[#allocation4 + $0x7b0] sm:$0xf]  ;;  %v3227_v62 = vld [vmem:[#allocation4 + $0x780] sm:$0xf]  ;;  %v3367_v0 = vld [vmem:[#allocation4 + $0x74] sm:$0xf] }
  0x61   :  { %1800 = vmatpush.bf16.msra.mxu3 %v2996_v30  ;;  %v3284_v30 = vor.u32 %v3608_v11, %v3283_v8  ;;  %v3552_v11 = vld [vmem:[#allocation4 + $0x634] sm:$0xf0]  ;;  %v3383_v4 = vld [vmem:[#allocation4 + $0xf4] sm:$0xf]  ;;  %v2389_v5 = vld [vmem:[#allocation4 + $0xf8] sm:$0xf0] }
  0x62   :  { %1759 = vmatpush.bf16.msra.mxu0 %v2796_v36  ;;  %v3752_v36 = vpack.c.bf16 %v77_v22, %v61_v19  ;;  %v3600_v19 = vld [vmem:[#allocation4 + $0x7b4] sm:$0xf0] }
  0x63   :  { %1773 = vmatpush.bf16.msra.mxu1 %v2860_v38  ;;  %v3606_v38 = vld [vmem:[#allocation4 + $0x7e4] sm:$0xf0] }
  0x64   :  { %1787 = vmatpush.bf16.msra.mxu2 %v2924_v40  ;;  %v3754_v40 = vpack.c.bf16 %v79_v24, %v63_v23  ;;  %v3276_v50 = vor.u32 %v3606_v38, %v3275_v37  ;;  %v3051_v23 = vld [vmem:[#allocation4 + $0x620] sm:$0xf]  ;;  %v3550_v24 = vld [vmem:[#allocation4 + $0x624] sm:$0xf0]  ;;  %v3548_v37 = vld [vmem:[#allocation4 + $0x614] sm:$0xf0] }
  0x65   :  { %1801 = vmatpush.bf16.msra.mxu3 %v2988_v46  ;;  %v3075_v46 = vld [vmem:[#allocation4 + $0x650] sm:$0xf]  ;;  %v3052_v33 = vor.u32 %v3550_v24, %v3051_v23  ;;  %v67_v23 = vld [vmem:[#allocation2 + $0x78] sm:$0xff] }
  0x66   :  { %1760 = vmatpush.bf16.msra.mxu0 %v2788_v54  ;;  %v3267_v54 = vld [vmem:[#allocation4 + $0x7d0] sm:$0xf]  ;;  %v3076_v56 = vor.u32 %v3556_v48, %v3075_v46  ;;  %v83_v24 = vld [vmem:[#allocation2 + $0xf8] sm:$0xff] }
  0x67   :  { %1774 = vmatpush.bf16.msra.mxu1 %v2852_v60  ;;  %v3067_v60 = vld [vmem:[#allocation4 + $0x640] sm:$0xf]  ;;  %v3268_v63 = vor.u32 %v3604_v55, %v3267_v54  ;;  %v3171_v46 = vld [vmem:[#allocation4 + $0x710] sm:$0xf]  ;;  %v3044_v54 = vor.u32 %v3548_v37, %v3043_v34  ;;  %v3397_v34 = vld [vmem:[#allocation4 + $0x164] sm:$0xf] }
  0x68   :  { %1788 = vmatpush.bf16.msra.mxu2 %v2916_v61  ;;  %v3554_v61 = vld [vmem:[#allocation4 + $0x644] sm:$0xf0]  ;;  %v3099_v55 = vld [vmem:[#allocation4 + $0x680] sm:$0xf]  ;;  %v2445_v37 = vld [vmem:[#allocation4 + $0x168] sm:$0xf0] }
  0x69   :  { %1802 = vmatpush.bf16.msra.mxu3 %v2980_v2  ;;  %v3195_v2 = vld [vmem:[#allocation4 + $0x740] sm:$0xf]  ;;  %v3068_v6 = vor.u32 %v3554_v61, %v3067_v60  ;;  %v3172_v61 = vor.u32 %v3580_v49, %v3171_v46  ;;  %v3766_v46 = vpack.c.bf16 %v83_v24, %v67_v23  ;;  %v2485_v23 = vld [vmem:[#allocation4 + $0x1b8] sm:$0xf0] }
  0x6a   :  { %1761 = vmatpush.bf16.msra.mxu0 %v2780_v9  ;;  %v3196_v8 = vor.u32 %v3586_v3, %v3195_v2  ;;  %v3059_v9 = vld [vmem:[#allocation4 + $0x630] sm:$0xf]  ;;  %v2325_v3 = vld [vmem:[#allocation4 + $0x78] sm:$0xf0] }
  0x6b   :  { %1775 = vmatpush.bf16.msra.mxu1 %v2844_v14  ;;  %v3568_v14 = vld [vmem:[#allocation4 + $0x6b4] sm:$0xf0] }
  0x6c   :  { %1789 = vmatpush.bf16.msra.mxu2 %v2908_v15  ;;  %v3187_v15 = vld [vmem:[#allocation4 + $0x730] sm:$0xf] }
  0x6d   :  { %1803 = vmatpush.bf16.msra.mxu3 %v2972_v20  ;;  %1762 = vmatmul.bf16.vlgmr.msra.gmra.mxu0 %v3748_v31  ;;  %v3060_v20 = vor.u32 %v3552_v11, %v3059_v9  ;;  %v3188_v22 = vor.u32 %v3584_v16, %v3187_v15  ;;  %v3036_v9 = vor.u32 %v3546_v53, %v3035_v52  ;;  %v2517_v11 = vld [vmem:[#allocation4 + $0x1f8] sm:$0xf0]  ;;  %v66_v16 = vld [vmem:[#allocation2 + $0x70] sm:$0xff] }
  0x6e   :  { %1810 = vmatpush.bf16.msrb.mxu0 %v3092_v21  ;;  %1776 = vmatmul.bf16.vlgmr.msra.gmra.mxu1 %v3752_v36  ;;  %v3124_v21 = vor.u32 %v3568_v14, %v3123_v12  ;;  %v64_v12 = vld [vmem:[#allocation2 + $0x60] sm:$0xff]  ;;  %v2309_v52 = vld [vmem:[#allocation4 + $0x58] sm:$0xf0]  ;;  %v3379_v53 = vld [vmem:[#allocation4 + $0xd4] sm:$0xf] }
  0x6f   :  { %1824 = vmatpush.bf16.msrb.mxu1 %v3156_v25  ;;  %1790 = vmatmul.bf16.vlgmr.msra.gmra.mxu2 %v3750_v35  ;;  %v3115_v25 = vld [vmem:[#allocation4 + $0x6a0] sm:$0xf] }
  0x70   :  { %1838 = vmatpush.bf16.msrb.mxu2 %v3220_v26  ;;  %1804 = vmatmul.bf16.vlgmr.msra.gmra.mxu3 %v3754_v40  ;;  %v3252_v26 = vor.u32 %v3600_v19, %v3251_v18  ;;  %v3116_v38 = vor.u32 %v3566_v27, %v3115_v25  ;;  %v82_v18 = vld [vmem:[#allocation2 + $0xf0] sm:$0xff]  ;;  %v65_v19 = vld [vmem:[#allocation2 + $0x68] sm:$0xff]  ;;  %v2392_v25 = vor.u32 %v3383_v4, %v2389_v5  ;;  %v3365_v27 = vld [vmem:[#allocation4 + $0x64] sm:$0xf] }
  0x71   :  { %1852 = vmatpush.bf16.msrb.mxu3 %v3284_v30  ;;  %v3243_v30 = vld [vmem:[#allocation4 + $0x7a0] sm:$0xf]  ;;  %v2365_v5 = vld [vmem:[#allocation4 + $0xc8] sm:$0xf0] }
  0x72   :  { %1811 = vmatpush.bf16.msrb.mxu0 %v3084_v41  ;;  %v3180_v41 = vor.u32 %v3582_v29, %v3179_v28  ;;  %v3244_v48 = vor.u32 %v3598_v32, %v3243_v30  ;;  %v2317_v28 = vld [vmem:[#allocation4 + $0x68] sm:$0xf0]  ;;  %v3381_v29 = vld [vmem:[#allocation4 + $0xe4] sm:$0xf] }
  0x73   :  { %1825 = vmatpush.bf16.msrb.mxu1 %v3148_v42  ;;  %v3107_v42 = vld [vmem:[#allocation4 + $0x690] sm:$0xf] }
  0x74   :  { %1839 = vmatpush.bf16.msrb.mxu2 %v3212_v45  ;;  %v3564_v45 = vld [vmem:[#allocation4 + $0x694] sm:$0xf0] }
  0x75   :  { %1853 = vmatpush.bf16.msrb.mxu3 %v3276_v50  ;;  %v3235_v50 = vld [vmem:[#allocation4 + $0x790] sm:$0xf]  ;;  %v3108_v60 = vor.u32 %v3564_v45, %v3107_v42  ;;  %v3413_v42 = vld [vmem:[#allocation4 + $0x1e4] sm:$0xf]  ;;  %v2509_v45 = vld [vmem:[#allocation4 + $0x1e8] sm:$0xf0] }
  0x76   :  { %1812 = vmatpush.bf16.msrb.mxu0 %v3076_v56  ;;  %v3562_v56 = vld [vmem:[#allocation4 + $0x684] sm:$0xf0]  ;;  %v3236_v2 = vor.u32 %v3596_v51, %v3235_v50  ;;  %v2448_v50 = vor.u32 %v3397_v34, %v2445_v37  ;;  %v3363_v51 = vld [vmem:[#allocation4 + $0x54] sm:$0xf]  ;;  %v3389_v34 = vld [vmem:[#allocation4 + $0x124] sm:$0xf] }
  0x77   :  { %1826 = vmatpush.bf16.msrb.mxu1 %v3140_v57  ;;  %v3163_v57 = vld [vmem:[#allocation4 + $0x700] sm:$0xf]  ;;  %v3100_v14 = vor.u32 %v3562_v56, %v3099_v55  ;;  %v2373_v55 = vld [vmem:[#allocation4 + $0xd8] sm:$0xf0]  ;;  %v3395_v56 = vld [vmem:[#allocation4 + $0x154] sm:$0xf] }
  0x78   :  { %1840 = vmatpush.bf16.msrb.mxu2 %v3204_v59  ;;  %v3578_v59 = vld [vmem:[#allocation4 + $0x704] sm:$0xf0]  ;;  %v2413_v37 = vld [vmem:[#allocation4 + $0x128] sm:$0xf0] }
  0x79   :  { %1854 = vmatpush.bf16.msrb.mxu3 %v3268_v63  ;;  %v3594_v63 = vld [vmem:[#allocation4 + $0x784] sm:$0xf0]  ;;  %v3164_v15 = vor.u32 %v3578_v59, %v3163_v57  ;;  %v2437_v57 = vld [vmem:[#allocation4 + $0x158] sm:$0xf0]  ;;  %v3411_v59 = vld [vmem:[#allocation4 + $0x1d4] sm:$0xf] }
  0x7a   :  { %1813 = vmatpush.bf16.msrb.mxu0 %v3068_v6  ;;  %v3399_v6 = vld [vmem:[#allocation4 + $0x174] sm:$0xf] }
  0x7b   :  { %1827 = vmatpush.bf16.msrb.mxu1 %v3132_v7  ;;  %v2453_v7 = vld [vmem:[#allocation4 + $0x178] sm:$0xf0] }
  0x7c   :  { %1841 = vmatpush.bf16.msrb.mxu2 %v3196_v8  ;;  %v3415_v8 = vld [vmem:[#allocation4 + $0x1f4] sm:$0xf] }
  0x7d   :  { %1855 = vmatpush.bf16.msrb.mxu3 %v3260_v13  ;;  %v80_v13 = vld [vmem:[#allocation2 + $0xe0] sm:$0xff]  ;;  %v2520_v30 = vor.u32 %v3415_v8, %v2517_v11 }
  0x7e   :  { %1814 = vmatpush.bf16.msrb.mxu0 %v3060_v20  ;;  %v3228_v20 = vor.u32 %v3594_v63, %v3227_v62  ;;  %v3760_v32 = vpack.c.bf16 %v80_v13, %v64_v12  ;;  %v2376_v62 = vor.u32 %v3379_v53, %v2373_v55  ;;  %v2440_v63 = vor.u32 %v3395_v56, %v2437_v57  ;;  %v3409_v8 = vld [vmem:[#allocation4 + $0x1c4] sm:$0xf]  ;;  %v3371_v53 = vld [vmem:[#allocation4 + $0x94] sm:$0xf]  ;;  %v2341_v55 = vld [vmem:[#allocation4 + $0x98] sm:$0xf0] }
  0x7f   :  { %1828 = vmatpush.bf16.msrb.mxu1 %v3124_v21  ;;  %v2328_v21 = vor.u32 %v3367_v0, %v2325_v3  ;;  %v3361_v0 = vld [vmem:[#allocation4 + $0x44] sm:$0xf]  ;;  %v3387_v56 = vld [vmem:[#allocation4 + $0x114] sm:$0xf]  ;;  %v2405_v57 = vld [vmem:[#allocation4 + $0x118] sm:$0xf0] }
  0x80   :  { %1842 = vmatpush.bf16.msrb.mxu2 %v3188_v22  ;;  %v81_v22 = vld [vmem:[#allocation2 + $0xe8] sm:$0xff]  ;;  %v3377_v3 = vld [vmem:[#allocation4 + $0xc4] sm:$0xf] }
  0x81   :  { %1856 = vmatpush.bf16.msrb.mxu3 %v3252_v26  ;;  %v2456_v26 = vor.u32 %v3399_v6, %v2453_v7  ;;  %v3393_v6 = vld [vmem:[#allocation4 + $0x144] sm:$0xf]  ;;  %v2429_v7 = vld [vmem:[#allocation4 + $0x148] sm:$0xf0]  ;;  %v2368_v12 = vor.u32 %v3377_v3, %v2365_v5 }
  0x82   :  { %1815 = vmatpush.bf16.msrb.mxu0 %v3052_v33  ;;  %v2381_v33 = vld [vmem:[#allocation4 + $0xe8] sm:$0xf0]  ;;  %v2432_v13 = vor.u32 %v3393_v6, %v2429_v7  ;;  %v3369_v3 = vld [vmem:[#allocation4 + $0x84] sm:$0xf] }
  0x83   :  { %1829 = vmatpush.bf16.msrb.mxu1 %v3116_v38  ;;  %v3762_v38 = vpack.c.bf16 %v82_v18, %v66_v16  ;;  %v2384_v49 = vor.u32 %v3381_v29, %v2381_v33  ;;  %v3375_v16 = vld [vmem:[#allocation4 + $0xb4] sm:$0xf]  ;;  %v3373_v29 = vld [vmem:[#allocation4 + $0xa4] sm:$0xf]  ;;  %v2349_v33 = vld [vmem:[#allocation4 + $0xa8] sm:$0xf0] }
  0x84   :  { %1843 = vmatpush.bf16.msrb.mxu2 %v3180_v41  ;;  %v3764_v41 = vpack.c.bf16 %v81_v22, %v65_v19  ;;  %v2357_v19 = vld [vmem:[#allocation4 + $0xb8] sm:$0xf0]  ;;  %v3407_v22 = vld [vmem:[#allocation4 + $0x1b4] sm:$0xf]  ;;  %v3385_v5 = vld [vmem:[#allocation4 + $0x104] sm:$0xf] }
  0x85   :  { %1857 = vmatpush.bf16.msrb.mxu3 %v3244_v48  ;;  %v2320_v48 = vor.u32 %v3365_v27, %v2317_v28  ;;  %v3357_v27 = vld [vmem:[#allocation4 + $0x24] sm:$0xf]  ;;  %v2285_v28 = vld [vmem:[#allocation4 + $0x28] sm:$0xf0] }
  0x86   :  { %1816 = vmatpush.bf16.msrb.mxu0 %v3044_v54  ;;  %v2512_v54 = vor.u32 %v3413_v42, %v2509_v45  ;;  %v3405_v42 = vld [vmem:[#allocation4 + $0x1a4] sm:$0xf]  ;;  %v2477_v45 = vld [vmem:[#allocation4 + $0x1a8] sm:$0xf0] }
  0x87   :  { %1830 = vmatpush.bf16.msrb.mxu1 %v3108_v60  ;;  %v2501_v60 = vld [vmem:[#allocation4 + $0x1d8] sm:$0xf0]  ;;  %v2397_v7 = vld [vmem:[#allocation4 + $0x108] sm:$0xf0] }
  0x88   :  { %1844 = vmatpush.bf16.msrb.mxu2 %v3172_v61  ;;  %v2312_v61 = vor.u32 %v3363_v51, %v2309_v52  ;;  %v2504_v4 = vor.u32 %v3411_v59, %v2501_v60  ;;  %v3355_v51 = vld [vmem:[#allocation4 + $0x14] sm:$0xf]  ;;  %v2277_v52 = vld [vmem:[#allocation4 + $0x18] sm:$0xf0] }
  0x89   :  { %1858 = vmatpush.bf16.msrb.mxu3 %v3236_v2  ;;  %v2301_v2 = vld [vmem:[#allocation4 + $0x48] sm:$0xf0]  ;;  %v3403_v59 = vld [vmem:[#allocation4 + $0x194] sm:$0xf]  ;;  %v2469_v60 = vld [vmem:[#allocation4 + $0x198] sm:$0xf0] }
  0x8a   :  { %1817 = vmatpush.bf16.msrb.mxu0 %v3036_v9  ;;  %v2493_v9 = vld [vmem:[#allocation4 + $0x1c8] sm:$0xf0]  ;;  %v2304_v11 = vor.u32 %v3361_v0, %v2301_v2  ;;  %v2344_v0 = vor.u32 %v3371_v53, %v2341_v55  ;;  %v2408_v2 = vor.u32 %v3387_v56, %v2405_v57  ;;  %v2472_v6 = vor.u32 %v3403_v59, %v2469_v60  ;;  %v3443_v53 = vld [vmem:[#allocation4 + $0x2d4] sm:$0xf]  ;;  %v2629_v55 = vld [vmem:[#allocation4 + $0x2d8] sm:$0xf0] }
  0x8b   :  { %1831 = vmatpush.bf16.msrb.mxu1 %v3100_v14  ;;  %v3359_v14 = vld [vmem:[#allocation4 + $0x34] sm:$0xf]  ;;  %v2496_v18 = vor.u32 %v3409_v8, %v2493_v9  ;;  %v3401_v8 = vld [vmem:[#allocation4 + $0x184] sm:$0xf]  ;;  %v2461_v9 = vld [vmem:[#allocation4 + $0x188] sm:$0xf0] }
  0x8c   :  { %1845 = vmatpush.bf16.msrb.mxu2 %v3164_v15  ;;  %v2293_v15 = vld [vmem:[#allocation4 + $0x38] sm:$0xf0]  ;;  %v3459_v56 = vld [vmem:[#allocation4 + $0x354] sm:$0xf] }
  0x8d   :  { %1859 = vmatpush.bf16.msrb.mxu3 %v3228_v20  ;;  %1818 = vmatmul.bf16.vlgmr.msrb.gmra.mxu0 %v3760_v32  ;;  %v3391_v20 = vld [vmem:[#allocation4 + $0x134] sm:$0xf]  ;;  %v2296_v24 = vor.u32 %v3359_v14, %v2293_v15  ;;  %v2645_v15 = vld [vmem:[#allocation4 + $0x2f8] sm:$0xf0] }
  0x8e   :  { %1866 = vmatpush.bf16.msra.mxu0 %v2328_v21  ;;  %1832 = vmatmul.bf16.vlgmr.msrb.gmra.mxu1 %v3764_v41  ;;  %v2421_v21 = vld [vmem:[#allocation4 + $0x138] sm:$0xf0]  ;;  %v3475_v59 = vld [vmem:[#allocation4 + $0x3d4] sm:$0xf] }
  0x8f   :  { %1880 = vmatpush.bf16.msra.mxu1 %v2392_v25  ;;  %1846 = vmatmul.bf16.vlgmr.msrb.gmra.mxu2 %v3762_v38  ;;  %v2360_v25 = vor.u32 %v3375_v16, %v2357_v19  ;;  %v3463_v16 = vld [vmem:[#allocation4 + $0x374] sm:$0xf]  ;;  %v2693_v57 = vld [vmem:[#allocation4 + $0x358] sm:$0xf0] }
  0x90   :  { %1894 = vmatpush.bf16.msra.mxu2 %v2456_v26  ;;  %1860 = vmatmul.bf16.vlgmr.msrb.gmra.mxu3 %v3766_v46  ;;  %v2424_v26 = vor.u32 %v3391_v20, %v2421_v21  ;;  %v2400_v20 = vor.u32 %v3385_v5, %v2397_v7  ;;  %v3479_v21 = vld [vmem:[#allocation4 + $0x3f4] sm:$0xf]  ;;  %v2757_v60 = vld [vmem:[#allocation4 + $0x3d8] sm:$0xf0]  ;;  %v3457_v5 = vld [vmem:[#allocation4 + $0x344] sm:$0xf] }
  0x91   :  { %1908 = vmatpush.bf16.msra.mxu3 %v2520_v30  ;;  %v2488_v30 = vor.u32 %v3407_v22, %v2485_v23  ;;  %v2773_v22 = vld [vmem:[#allocation4 + $0x3f8] sm:$0xf0]  ;;  %v2464_v23 = vor.u32 %v3401_v8, %v2461_v9  ;;  %v3473_v7 = vld [vmem:[#allocation4 + $0x3c4] sm:$0xf]  ;;  %v3423_v9 = vld [vmem:[#allocation4 + $0x234] sm:$0xf] }
  0x92   :  { %1867 = vmatpush.bf16.msra.mxu0 %v2320_v48  ;;  %v2288_v48 = vor.u32 %v3357_v27, %v2285_v28  ;;  %v3429_v27 = vld [vmem:[#allocation4 + $0x264] sm:$0xf]  ;;  %v2573_v28 = vld [vmem:[#allocation4 + $0x268] sm:$0xf0] }
  0x93   :  { %1881 = vmatpush.bf16.msra.mxu1 %v2384_v49  ;;  %v2352_v49 = vor.u32 %v3373_v29, %v2349_v33  ;;  %v3445_v29 = vld [vmem:[#allocation4 + $0x2e4] sm:$0xf]  ;;  %v2637_v33 = vld [vmem:[#allocation4 + $0x2e8] sm:$0xf0] }
  0x94   :  { %1895 = vmatpush.bf16.msra.mxu2 %v2448_v50  ;;  %v2416_v50 = vor.u32 %v3389_v34, %v2413_v37  ;;  %v3461_v34 = vld [vmem:[#allocation4 + $0x364] sm:$0xf]  ;;  %v2701_v37 = vld [vmem:[#allocation4 + $0x368] sm:$0xf0] }
  0x95   :  { %1909 = vmatpush.bf16.msra.mxu3 %v2512_v54  ;;  %v2480_v54 = vor.u32 %v3405_v42, %v2477_v45  ;;  %v3477_v42 = vld [vmem:[#allocation4 + $0x3e4] sm:$0xf]  ;;  %v2765_v45 = vld [vmem:[#allocation4 + $0x3e8] sm:$0xf0] }
  0x96   :  { %1868 = vmatpush.bf16.msra.mxu0 %v2312_v61  ;;  %v2280_v61 = vor.u32 %v3355_v51, %v2277_v52  ;;  %v3427_v51 = vld [vmem:[#allocation4 + $0x254] sm:$0xf]  ;;  %v2565_v52 = vld [vmem:[#allocation4 + $0x258] sm:$0xf0] }
  0x97   :  { %1882 = vmatpush.bf16.msra.mxu1 %v2376_v62  ;;  %v3353_v62 = vld [vmem:[#allocation4 + $0x4] sm:$0xf] }
  0x98   :  { %1896 = vmatpush.bf16.msra.mxu2 %v2440_v63  ;;  %v2269_v63 = vld [vmem:[#allocation4 + $0x8] sm:$0xf0] }
  0x99   :  { %1910 = vmatpush.bf16.msra.mxu3 %v2504_v4  ;;  %v2333_v4 = vld [vmem:[#allocation4 + $0x88] sm:$0xf0]  ;;  %v2272_v14 = vor.u32 %v3353_v62, %v2269_v63  ;;  %v2632_v62 = vor.u32 %v3443_v53, %v2629_v55  ;;  %v2696_v63 = vor.u32 %v3459_v56, %v2693_v57  ;;  %v2661_v53 = vld [vmem:[#allocation4 + $0x318] sm:$0xf0]  ;;  %v3417_v57 = vld [vmem:[#allocation4 + $0x204] sm:$0xf] }
  0x9a   :  { %1869 = vmatpush.bf16.msra.mxu0 %v2304_v11  ;;  %v3431_v11 = vld [vmem:[#allocation4 + $0x274] sm:$0xf]  ;;  %v2336_v19 = vor.u32 %v3369_v3, %v2333_v4  ;;  %v3441_v3 = vld [vmem:[#allocation4 + $0x2c4] sm:$0xf]  ;;  %v2760_v4 = vor.u32 %v3475_v59, %v2757_v60  ;;  %v2725_v55 = vld [vmem:[#allocation4 + $0x398] sm:$0xf0] }
  0x9b   :  { %1883 = vmatpush.bf16.msra.mxu1 %v2368_v12  ;;  %v2581_v12 = vld [vmem:[#allocation4 + $0x278] sm:$0xf0]  ;;  %v2525_v59 = vld [vmem:[#allocation4 + $0x208] sm:$0xf0] }
  0x9c   :  { %1897 = vmatpush.bf16.msra.mxu2 %v2432_v13  ;;  %v3447_v13 = vld [vmem:[#allocation4 + $0x2f4] sm:$0xf] }
  0x9d   :  { %1911 = vmatpush.bf16.msra.mxu3 %v2496_v18  ;;  %v2709_v18 = vld [vmem:[#allocation4 + $0x378] sm:$0xf0] }
  0x9e   :  { %1870 = vmatpush.bf16.msra.mxu0 %v2296_v24  ;;  %v2584_v24 = vor.u32 %v3431_v11, %v2581_v12  ;;  %v2549_v11 = vld [vmem:[#allocation4 + $0x238] sm:$0xf0]  ;;  %v3439_v12 = vld [vmem:[#allocation4 + $0x2b4] sm:$0xf] }
  0x9f   :  { %1884 = vmatpush.bf16.msra.mxu1 %v2360_v25  ;;  %v2648_v25 = vor.u32 %v3447_v13, %v2645_v15  ;;  %v3455_v15 = vld [vmem:[#allocation4 + $0x334] sm:$0xf] }
  0xa0   :  { %1898 = vmatpush.bf16.msra.mxu2 %v2424_v26  ;;  %v2712_v26 = vor.u32 %v3463_v16, %v2709_v18  ;;  %v2677_v16 = vld [vmem:[#allocation4 + $0x338] sm:$0xf0]  ;;  %v3471_v18 = vld [vmem:[#allocation4 + $0x3b4] sm:$0xf] }
  0xa1   :  { %1912 = vmatpush.bf16.msra.mxu3 %v2488_v30  ;;  %v2776_v30 = vor.u32 %v3479_v21, %v2773_v22  ;;  %v2680_v22 = vor.u32 %v3455_v15, %v2677_v16 }
  0xa2   :  { %1871 = vmatpush.bf16.msra.mxu0 %v2288_v48  ;;  %v2576_v48 = vor.u32 %v3429_v27, %v2573_v28  ;;  %v2605_v27 = vld [vmem:[#allocation4 + $0x2a8] sm:$0xf0]  ;;  %v3453_v28 = vld [vmem:[#allocation4 + $0x324] sm:$0xf] }
  0xa3   :  { %1885 = vmatpush.bf16.msra.mxu1 %v2352_v49  ;;  %v2640_v49 = vor.u32 %v3445_v29, %v2637_v33  ;;  %v2669_v29 = vld [vmem:[#allocation4 + $0x328] sm:$0xf0] }
  0xa4   :  { %1899 = vmatpush.bf16.msra.mxu2 %v2416_v50  ;;  %v2704_v50 = vor.u32 %v3461_v34, %v2701_v37  ;;  %v2733_v33 = vld [vmem:[#allocation4 + $0x3a8] sm:$0xf0] }
  0xa5   :  { %1913 = vmatpush.bf16.msra.mxu3 %v2480_v54  ;;  %v2768_v54 = vor.u32 %v3477_v42, %v2765_v45  ;;  %v2672_v42 = vor.u32 %v3453_v28, %v2669_v29  ;;  %v3419_v45 = vld [vmem:[#allocation4 + $0x214] sm:$0xf] }
  0xa6   :  { %1872 = vmatpush.bf16.msra.mxu0 %v2280_v61  ;;  %v2568_v61 = vor.u32 %v3427_v51, %v2565_v52  ;;  %v2597_v51 = vld [vmem:[#allocation4 + $0x298] sm:$0xf0]  ;;  %v3451_v52 = vld [vmem:[#allocation4 + $0x314] sm:$0xf] }
  0xa7   :  { %1886 = vmatpush.bf16.msra.mxu1 %v2344_v0  ;;  %v3425_v0 = vld [vmem:[#allocation4 + $0x244] sm:$0xf] }
  0xa8   :  { %1900 = vmatpush.bf16.msra.mxu2 %v2408_v2  ;;  %v2557_v2 = vld [vmem:[#allocation4 + $0x248] sm:$0xf0] }
  0xa9   :  { %1914 = vmatpush.bf16.msra.mxu3 %v2472_v6  ;;  %v2685_v6 = vld [vmem:[#allocation4 + $0x348] sm:$0xf0] }
  0xaa   :  { %1873 = vmatpush.bf16.msra.mxu0 %v2272_v14  ;;  %v2613_v14 = vld [vmem:[#allocation4 + $0x2b8] sm:$0xf0] }
  0xab   :  { %1887 = vmatpush.bf16.msra.mxu1 %v2336_v19  ;;  %v2741_v19 = vld [vmem:[#allocation4 + $0x3b8] sm:$0xf0]  ;;  %v2616_v21 = vor.u32 %v3439_v12, %v2613_v14  ;;  %v3543_v12 = vld [vmem:[#allocation4 + $0x5f4] sm:$0xf] }
  0xac   :  { %1901 = vmatpush.bf16.msra.mxu2 %v2400_v20  ;;  %v2552_v20 = vor.u32 %v3423_v9, %v2549_v11 }
  0xad   :  { %1915 = vmatpush.bf16.msra.mxu3 %v2464_v23  ;;  %1874 = vmatmul.bf16.vlgmr.msra.gmra.mxu0 %v3724_v58  ;;  %v2621_v58 = vld [vmem:[#allocation4 + $0x2c8] sm:$0xf0]  ;;  %v3421_v23 = vld [vmem:[#allocation4 + $0x224] sm:$0xf] }
  0xae   :  { %1922 = vmatpush.bf16.msrb.mxu0 %v2584_v24  ;;  %1888 = vmatmul.bf16.vlgmr.msra.gmra.mxu1 %v3730_v10  ;;  %v2560_v10 = vor.u32 %v3425_v0, %v2557_v2  ;;  %v2624_v8 = vor.u32 %v3441_v3, %v2621_v58  ;;  %v2541_v24 = vld [vmem:[#allocation4 + $0x228] sm:$0xf0]  ;;  %v3449_v0 = vld [vmem:[#allocation4 + $0x304] sm:$0xf] }
  0xaf   :  { %1936 = vmatpush.bf16.msrb.mxu1 %v2648_v25  ;;  %1902 = vmatmul.bf16.vlgmr.msra.gmra.mxu2 %v3726_v1  ;;  %v2749_v1 = vld [vmem:[#allocation4 + $0x3c8] sm:$0xf0]  ;;  %v3437_v25 = vld [vmem:[#allocation4 + $0x2a4] sm:$0xf]  ;;  %v2544_v34 = vor.u32 %v3421_v23, %v2541_v24 }
  0xb0   :  { %1950 = vmatpush.bf16.msrb.mxu2 %v2712_v26  ;;  %1916 = vmatmul.bf16.vlgmr.msra.gmra.mxu3 %v3732_v17  ;;  %v2688_v17 = vor.u32 %v3457_v5, %v2685_v6  ;;  %v2752_v13 = vor.u32 %v3473_v7, %v2749_v1  ;;  %v2744_v26 = vor.u32 %v3471_v18, %v2741_v19  ;;  %v2653_v3 = vld [vmem:[#allocation4 + $0x308] sm:$0xf0]  ;;  %v3495_v5 = vld [vmem:[#allocation4 + $0x474] sm:$0xf]  ;;  %v2837_v6 = vld [vmem:[#allocation4 + $0x478] sm:$0xf0] }
  0xb1   :  { %1964 = vmatpush.bf16.msrb.mxu3 %v2776_v30  ;;  %v3469_v30 = vld [vmem:[#allocation4 + $0x3a4] sm:$0xf]  ;;  %v2608_v37 = vor.u32 %v3437_v25, %v2605_v27  ;;  %v2717_v58 = vld [vmem:[#allocation4 + $0x388] sm:$0xf0]  ;;  %v3511_v7 = vld [vmem:[#allocation4 + $0x4f4] sm:$0xf]  ;;  %v2528_v1 = vor.u32 %v3417_v57, %v2525_v59  ;;  %v2656_v11 = vor.u32 %v3449_v0, %v2653_v3  ;;  %v2840_v15 = vor.u32 %v3495_v5, %v2837_v6 }
  0xb2   :  { %1923 = vmatpush.bf16.msrb.mxu0 %v2576_v48  ;;  %v2533_v48 = vld [vmem:[#allocation4 + $0x218] sm:$0xf0]  ;;  %v3493_v19 = vld [vmem:[#allocation4 + $0x464] sm:$0xf]  ;;  %v2893_v23 = vld [vmem:[#allocation4 + $0x4e8] sm:$0xf0] }
  0xb3   :  { %1937 = vmatpush.bf16.msrb.mxu1 %v2640_v49  ;;  %v3435_v49 = vld [vmem:[#allocation4 + $0x294] sm:$0xf]  ;;  %v2536_v56 = vor.u32 %v3419_v45, %v2533_v48  ;;  %v3525_v24 = vld [vmem:[#allocation4 + $0x564] sm:$0xf]  ;;  %v2957_v25 = vld [vmem:[#allocation4 + $0x568] sm:$0xf0] }
  0xb4   :  { %1951 = vmatpush.bf16.msrb.mxu2 %v2704_v50  ;;  %v2736_v50 = vor.u32 %v3469_v30, %v2733_v33  ;;  %v2600_v60 = vor.u32 %v3435_v49, %v2597_v51  ;;  %v3021_v27 = vld [vmem:[#allocation4 + $0x5e8] sm:$0xf0]  ;;  %v2960_v30 = vor.u32 %v3525_v24, %v2957_v25  ;;  %v3491_v33 = vld [vmem:[#allocation4 + $0x454] sm:$0xf]  ;;  %v2885_v45 = vld [vmem:[#allocation4 + $0x4d8] sm:$0xf0] }
  0xb5   :  { %1965 = vmatpush.bf16.msrb.mxu3 %v2768_v54  ;;  %v3467_v54 = vld [vmem:[#allocation4 + $0x394] sm:$0xf]  ;;  %v2949_v49 = vld [vmem:[#allocation4 + $0x558] sm:$0xf0]  ;;  %v2877_v59 = vld [vmem:[#allocation4 + $0x4c8] sm:$0xf0] }
  0xb6   :  { %1924 = vmatpush.bf16.msrb.mxu0 %v2568_v61  ;;  %v2664_v61 = vor.u32 %v3451_v52, %v2661_v53  ;;  %v2728_v2 = vor.u32 %v3467_v54, %v2725_v55  ;;  %v3523_v48 = vld [vmem:[#allocation4 + $0x554] sm:$0xf]  ;;  %v3013_v51 = vld [vmem:[#allocation4 + $0x5d8] sm:$0xf0]  ;;  %v3489_v55 = vld [vmem:[#allocation4 + $0x444] sm:$0xf] }
  0xb7   :  { %1938 = vmatpush.bf16.msrb.mxu1 %v2632_v62  ;;  %v3433_v62 = vld [vmem:[#allocation4 + $0x284] sm:$0xf]  ;;  %v2952_v54 = vor.u32 %v3523_v48, %v2949_v49  ;;  %v3487_v0 = vld [vmem:[#allocation4 + $0x434] sm:$0xf]  ;;  %v2933_v6 = vld [vmem:[#allocation4 + $0x538] sm:$0xf0] }
  0xb8   :  { %1952 = vmatpush.bf16.msrb.mxu2 %v2696_v63  ;;  %v2589_v63 = vld [vmem:[#allocation4 + $0x288] sm:$0xf0]  ;;  %v3503_v3 = vld [vmem:[#allocation4 + $0x4b4] sm:$0xf]  ;;  %v3481_v49 = vld [vmem:[#allocation4 + $0x404] sm:$0xf] }
  0xb9   :  { %1966 = vmatpush.bf16.msrb.mxu3 %v2760_v4  ;;  %v3465_v4 = vld [vmem:[#allocation4 + $0x384] sm:$0xf]  ;;  %v2592_v9 = vor.u32 %v3433_v62, %v2589_v63  ;;  %v3519_v5 = vld [vmem:[#allocation4 + $0x534] sm:$0xf] }
  0xba   :  { %1925 = vmatpush.bf16.msrb.mxu0 %v2560_v10  ;;  %v2901_v10 = vld [vmem:[#allocation4 + $0x4f8] sm:$0xf0]  ;;  %v2720_v14 = vor.u32 %v3465_v4, %v2717_v58  ;;  %v3483_v25 = vld [vmem:[#allocation4 + $0x414] sm:$0xf] }
  0xbb   :  { %1939 = vmatpush.bf16.msrb.mxu1 %v2624_v8  ;;  %v3527_v8 = vld [vmem:[#allocation4 + $0x574] sm:$0xf]  ;;  %v2904_v16 = vor.u32 %v3511_v7, %v2901_v10  ;;  %v2869_v58 = vld [vmem:[#allocation4 + $0x4b8] sm:$0xf0]  ;;  %v3780_v7 = vpop.f32.mrf.mxu0 }
  0xbc   :  { %1953 = vmatpush.bf16.msrb.mxu2 %v2688_v17  ;;  %v2965_v17 = vld [vmem:[#allocation4 + $0x578] sm:$0xf0] }
  0xbd   :  { %1967 = vmatpush.bf16.msrb.mxu3 %v2752_v13  ;;  %v3029_v13 = vld [vmem:[#allocation4 + $0x5f8] sm:$0xf0]  ;;  %v2968_v18 = vor.u32 %v3527_v8, %v2965_v17  ;;  %v3782_v8 = vpop.f32.mrf.mxu1 }
  0xbe   :  { %1926 = vmatpush.bf16.msrb.mxu0 %v2552_v20  ;;  %v2829_v20 = vld [vmem:[#allocation4 + $0x468] sm:$0xf0]  ;;  %v2997_v10 = vld [vmem:[#allocation4 + $0x5b8] sm:$0xf0] }
  0xbf   :  { %1940 = vmatpush.bf16.msrb.mxu1 %v2616_v21  ;;  %v3509_v21 = vld [vmem:[#allocation4 + $0x4e4] sm:$0xf]  ;;  %v2832_v28 = vor.u32 %v3493_v19, %v2829_v20  ;;  %v2925_v19 = vld [vmem:[#allocation4 + $0x528] sm:$0xf0] }
  0xc0   :  { %1954 = vmatpush.bf16.msrb.mxu2 %v2680_v22  ;;  %v3032_v22 = vor.u32 %v3543_v12, %v3029_v13  ;;  %v2896_v29 = vor.u32 %v3509_v21, %v2893_v23  ;;  %v3485_v12 = vld [vmem:[#allocation4 + $0x424] sm:$0xf]  ;;  %v2797_v13 = vld [vmem:[#allocation4 + $0x428] sm:$0xf0] }
  0xc1   :  { %1968 = vmatpush.bf16.msrb.mxu3 %v2744_v26  ;;  %v3541_v26 = vld [vmem:[#allocation4 + $0x5e4] sm:$0xf]  ;;  %v2989_v21 = vld [vmem:[#allocation4 + $0x5a8] sm:$0xf0] }
  0xc2   :  { %1927 = vmatpush.bf16.msrb.mxu0 %v2544_v34  ;;  %v2821_v34 = vld [vmem:[#allocation4 + $0x458] sm:$0xf0]  ;;  %v3533_v20 = vld [vmem:[#allocation4 + $0x5a4] sm:$0xf] }
  0xc3   :  { %1941 = vmatpush.bf16.msrb.mxu1 %v2608_v37  ;;  %v3507_v37 = vld [vmem:[#allocation4 + $0x4d4] sm:$0xf]  ;;  %v2824_v52 = vor.u32 %v3491_v33, %v2821_v34  ;;  %v2917_v34 = vld [vmem:[#allocation4 + $0x518] sm:$0xf0] }
  0xc4   :  { %1955 = vmatpush.bf16.msrb.mxu2 %v2672_v42  ;;  %v3024_v42 = vor.u32 %v3541_v26, %v3021_v27  ;;  %v2888_v53 = vor.u32 %v3507_v37, %v2885_v45  ;;  %v2789_v26 = vld [vmem:[#allocation4 + $0x418] sm:$0xf0]  ;;  %v3499_v27 = vld [vmem:[#allocation4 + $0x494] sm:$0xf]  ;;  %v3786_v37 = vpop.f32.mrf.mxu3 }
  0xc5   :  { %1969 = vmatpush.bf16.msrb.mxu3 %v2736_v50  ;;  %v3539_v50 = vld [vmem:[#allocation4 + $0x5d4] sm:$0xf]  ;;  %v2981_v45 = vld [vmem:[#allocation4 + $0x598] sm:$0xf0]  ;;  %v2792_v48 = vor.u32 %v3483_v25, %v2789_v26 }
  0xc6   :  { %1928 = vmatpush.bf16.msrb.mxu0 %v2536_v56  ;;  %v3505_v56 = vld [vmem:[#allocation4 + $0x4c4] sm:$0xf]  ;;  %v3016_v57 = vor.u32 %v3539_v50, %v3013_v51  ;;  %v3515_v33 = vld [vmem:[#allocation4 + $0x514] sm:$0xf]  ;;  %v2781_v50 = vld [vmem:[#allocation4 + $0x408] sm:$0xf0] }
  0xc7   :  { %1942 = vmatpush.bf16.msrb.mxu1 %v2600_v60  ;;  %v3521_v60 = vld [vmem:[#allocation4 + $0x544] sm:$0xf]  ;;  %v3791_v51 = vld [vmem:[%s3893_s2] sm:$0x3] }
  0xc8   :  { %1956 = vmatpush.bf16.msrb.mxu2 %v2664_v61  ;;  %v3537_v61 = vld [vmem:[#allocation4 + $0x5c4] sm:$0xf] }
  0xc9   :  { %1970 = vmatpush.bf16.msrb.mxu3 %v2728_v2  ;;  %v2805_v2 = vld [vmem:[#allocation4 + $0x438] sm:$0xf0] }
  0xca   :  { %1929 = vmatpush.bf16.msrb.mxu0 %v2528_v1  ;;  %v3535_v1 = vld [vmem:[#allocation4 + $0x5b4] sm:$0xf]  ;;  %v2808_v17 = vor.u32 %v3487_v0, %v2805_v2  ;;  %v3157_v0 = vld [vmem:[#allocation4 + $0x6f8] sm:$0xf0] }
  0xcb   :  { %1943 = vmatpush.bf16.msrb.mxu1 %v2592_v9  ;;  %v2872_v9 = vor.u32 %v3503_v3, %v2869_v58  ;;  %v3591_v2 = vld [vmem:[#allocation4 + $0x774] sm:$0xf]  ;;  %v3221_v3 = vld [vmem:[#allocation4 + $0x778] sm:$0xf0] }
  0xcc   :  { %1957 = vmatpush.bf16.msrb.mxu2 %v2656_v11  ;;  %v2936_v11 = vor.u32 %v3519_v5, %v2933_v6  ;;  %v3607_v5 = vld [vmem:[#allocation4 + $0x7f4] sm:$0xf]  ;;  %v3285_v6 = vld [vmem:[#allocation4 + $0x7f8] sm:$0xf0] }
  0xcd   :  { %1971 = vmatpush.bf16.msrb.mxu3 %v2720_v14  ;;  %1930 = vmatmul.bf16.vlgmr.msrb.gmra.mxu0 %v3736_v39  ;;  %v2813_v39 = vld [vmem:[#allocation4 + $0x448] sm:$0xf0]  ;;  %v3501_v14 = vld [vmem:[#allocation4 + $0x4a4] sm:$0xf] }
  0xce   :  { %1978 = vmatpush.bf16.msra.mxu0 %v2840_v15  ;;  %1944 = vmatmul.bf16.vlgmr.msrb.gmra.mxu1 %v3740_v44  ;;  %v3005_v44 = vld [vmem:[#allocation4 + $0x5c8] sm:$0xf0]  ;;  %v2816_v62 = vor.u32 %v3489_v55, %v2813_v39  ;;  %v3000_v15 = vor.u32 %v3535_v1, %v2997_v10  ;;  %v3497_v55 = vld [vmem:[#allocation4 + $0x484] sm:$0xf]  ;;  %v358_v1 = vperm.slane %v3791_v51, 0 }
  0xcf   :  { %1992 = vmatpush.bf16.msra.mxu1 %v2904_v16  ;;  %1958 = vmatmul.bf16.vlgmr.msrb.gmra.mxu2 %v3738_v43  ;;  %v2941_v43 = vld [vmem:[#allocation4 + $0x548] sm:$0xf0]  ;;  %v3008_v4 = vor.u32 %v3537_v61, %v3005_v44  ;;  %v3559_v44 = vld [vmem:[#allocation4 + $0x674] sm:$0xf] }
  0xd0   :  { %2006 = vmatpush.bf16.msra.mxu2 %v2968_v18  ;;  %1972 = vmatmul.bf16.vlgmr.msrb.gmra.mxu3 %v3742_v47  ;;  %v2880_v47 = vor.u32 %v3505_v56, %v2877_v59  ;;  %v2944_v63 = vor.u32 %v3521_v60, %v2941_v43  ;;  %v2861_v16 = vld [vmem:[#allocation4 + $0x4a8] sm:$0xf0]  ;;  %v3517_v18 = vld [vmem:[#allocation4 + $0x524] sm:$0xf]  ;;  %v1652_v25 = vadd.f32 %v3780_v7, %v358_v1  ;;  %v3603_v7 = vld [vmem:[#allocation4 + $0x7d4] sm:$0xf] }
  0xd1   :  { %2020 = vmatpush.bf16.msra.mxu3 %v3032_v22  ;;  %v2800_v22 = vor.u32 %v3485_v12, %v2797_v13  ;;  %v2864_v23 = vor.u32 %v3501_v14, %v2861_v16  ;;  %v2928_v24 = vor.u32 %v3517_v18, %v2925_v19  ;;  %v2845_v39 = vld [vmem:[#allocation4 + $0x488] sm:$0xf0]  ;;  %v3513_v56 = vld [vmem:[#allocation4 + $0x504] sm:$0xf]  ;;  %v3288_v16 = vor.u32 %v3607_v5, %v3285_v6  ;;  %v3567_v5 = vld [vmem:[#allocation4 + $0x6b4] sm:$0xf] }
  0xd2   :  { %1979 = vmatpush.bf16.msra.mxu0 %v2832_v28  ;;  %v3784_v28 = vpop.f32.mrf.mxu2  ;;  %v2909_v60 = vld [vmem:[#allocation4 + $0x508] sm:$0xf0]  ;;  %v3529_v43 = vld [vmem:[#allocation4 + $0x584] sm:$0xf] }
  0xd3   :  { %1993 = vmatpush.bf16.msra.mxu1 %v2896_v29  ;;  %v2992_v29 = vor.u32 %v3533_v20, %v2989_v21  ;;  %v2973_v61 = vld [vmem:[#allocation4 + $0x588] sm:$0xf0]  ;;  %v2912_v58 = vor.u32 %v3513_v56, %v2909_v60  ;;  %v3557_v12 = vld [vmem:[#allocation4 + $0x664] sm:$0xf]  ;;  %v3800_v21 = vpop.f32.mrf.mxu3 }
  0xd4   :  { %2007 = vmatpush.bf16.msra.mxu2 %v2960_v30  ;;  %v2853_v30 = vld [vmem:[#allocation4 + $0x498] sm:$0xf0]  ;;  %v2976_v10 = vor.u32 %v3529_v43, %v2973_v61  ;;  %v3085_v13 = vld [vmem:[#allocation4 + $0x668] sm:$0xf0]  ;;  %v3573_v14 = vld [vmem:[#allocation4 + $0x6e4] sm:$0xf] }
  0xd5   :  { %2021 = vmatpush.bf16.msra.mxu3 %v3024_v42  ;;  %v3531_v42 = vld [vmem:[#allocation4 + $0x594] sm:$0xf]  ;;  %v3149_v18 = vld [vmem:[#allocation4 + $0x6e8] sm:$0xf0]  ;;  %v3589_v19 = vld [vmem:[#allocation4 + $0x764] sm:$0xf] }
  0xd6   :  { %1980 = vmatpush.bf16.msra.mxu0 %v2824_v52  ;;  %v3793_v52 = vpop.f32.mrf.mxu0  ;;  %v2984_v59 = vor.u32 %v3531_v42, %v2981_v45  ;;  %v3213_v20 = vld [vmem:[#allocation4 + $0x768] sm:$0xf0]  ;;  %v3553_v56 = vld [vmem:[#allocation4 + $0x644] sm:$0xf] }
  0xd7   :  { %1994 = vmatpush.bf16.msra.mxu1 %v2888_v53  ;;  %v2856_v53 = vor.u32 %v3499_v27, %v2853_v30  ;;  %v3152_v27 = vor.u32 %v3573_v14, %v3149_v18  ;;  %v3555_v30 = vld [vmem:[#allocation4 + $0x654] sm:$0xf]  ;;  %v3569_v60 = vld [vmem:[#allocation4 + $0x6c4] sm:$0xf] }
  0xd8   :  { %2008 = vmatpush.bf16.msra.mxu2 %v2952_v54  ;;  %v2920_v54 = vor.u32 %v3515_v33, %v2917_v34  ;;  %v3077_v33 = vld [vmem:[#allocation4 + $0x658] sm:$0xf0]  ;;  %v3571_v34 = vld [vmem:[#allocation4 + $0x6d4] sm:$0xf]  ;;  %v3585_v61 = vld [vmem:[#allocation4 + $0x744] sm:$0xf] }
  0xd9   :  { %2022 = vmatpush.bf16.msra.mxu3 %v3016_v57  ;;  %v3795_v57 = vpop.f32.mrf.mxu1 }
  0xda   :  { %1981 = vmatpush.bf16.msra.mxu0 %v2816_v62  ;;  %v3093_v62 = vld [vmem:[#allocation4 + $0x678] sm:$0xf0] }
  0xdb   :  { %1995 = vmatpush.bf16.msra.mxu1 %v2880_v47  ;;  %v3575_v47 = vld [vmem:[#allocation4 + $0x6f4] sm:$0xf] }
  0xdc   :  { %2009 = vmatpush.bf16.msra.mxu2 %v2944_v63  ;;  %v2784_v63 = vor.u32 %v3481_v49, %v2781_v50  ;;  %v3587_v49 = vld [vmem:[#allocation4 + $0x754] sm:$0xf]  ;;  %v3205_v50 = vld [vmem:[#allocation4 + $0x758] sm:$0xf0] }
  0xdd   :  { %2023 = vmatpush.bf16.msra.mxu3 %v3008_v4  ;;  %v2848_v4 = vor.u32 %v3497_v55, %v2845_v39  ;;  %v1666_v55 = vadd.f32 %v3782_v8, %v1652_v25  ;;  %v3181_v25 = vld [vmem:[#allocation4 + $0x728] sm:$0xf0] }
  0xde   :  { %1982 = vmatpush.bf16.msra.mxu0 %v2808_v17  ;;  %v3096_v17 = vor.u32 %v3559_v44, %v3093_v62  ;;  %v3803_v26 = vpop.f32.mrf.mxu0  ;;  %v1654_v44 = vadd.f32 %v3793_v52, %v358_v1  ;;  %v3601_v62 = vld [vmem:[#allocation4 + $0x7c4] sm:$0xf]  ;;  %v3125_v52 = vld [vmem:[#allocation4 + $0x6b8] sm:$0xf0]  ;;  %v3583_v1 = vld [vmem:[#allocation4 + $0x734] sm:$0xf] }
  0xdf   :  { %1996 = vmatpush.bf16.msra.mxu1 %v2872_v9  ;;  %v3160_v9 = vor.u32 %v3575_v47, %v3157_v0  ;;  %v3816_v0 = vpop.f32.mrf.mxu3 }
  0xe0   :  { %2010 = vmatpush.bf16.msra.mxu2 %v2936_v11  ;;  %v3224_v11 = vor.u32 %v3591_v2, %v3221_v3 }
  0xe1   :  { %2024 = vmatpush.bf16.msra.mxu3 %v3000_v15  ;;  %v3798_v15 = vpop.f32.mrf.mxu2  ;;  %v3805_v42 = vpop.f32.mrf.mxu1 }
  0xe2   :  { %1983 = vmatpush.bf16.msra.mxu0 %v2800_v22  ;;  %v3605_v22 = vld [vmem:[#allocation4 + $0x7e4] sm:$0xf] }
  0xe3   :  { %1997 = vmatpush.bf16.msra.mxu1 %v2864_v23  ;;  %v3277_v23 = vld [vmem:[#allocation4 + $0x7e8] sm:$0xf0] }
  0xe4   :  { %2011 = vmatpush.bf16.msra.mxu2 %v2928_v24  ;;  %v3088_v24 = vor.u32 %v3557_v12, %v3085_v13  ;;  %v3280_v45 = vor.u32 %v3605_v22, %v3277_v23  ;;  %v3253_v12 = vld [vmem:[#allocation4 + $0x7b8] sm:$0xf0]  ;;  %v3565_v22 = vld [vmem:[#allocation4 + $0x6a4] sm:$0xf] }
  0xe5   :  { %2025 = vmatpush.bf16.msra.mxu3 %v2992_v29  ;;  %v3216_v29 = vor.u32 %v3589_v19, %v3213_v20  ;;  %v3549_v19 = vld [vmem:[#allocation4 + $0x624] sm:$0xf]  ;;  %v3053_v20 = vld [vmem:[#allocation4 + $0x628] sm:$0xf0] }
  0xe6   :  { %1984 = vmatpush.bf16.msra.mxu0 %v2792_v48  ;;  %v3141_v48 = vld [vmem:[#allocation4 + $0x6d8] sm:$0xf0] }
  0xe7   :  { %1998 = vmatpush.bf16.msra.mxu1 %v2856_v53  ;;  %v3269_v53 = vld [vmem:[#allocation4 + $0x7d8] sm:$0xf0]  ;;  %v3144_v39 = vor.u32 %v3571_v34, %v3141_v48  ;;  %v3547_v48 = vld [vmem:[#allocation4 + $0x614] sm:$0xf] }
  0xe8   :  { %2012 = vmatpush.bf16.msra.mxu2 %v2920_v54  ;;  %v3080_v54 = vor.u32 %v3555_v30, %v3077_v33  ;;  %v3272_v43 = vor.u32 %v3603_v7, %v3269_v53  ;;  %v3245_v30 = vld [vmem:[#allocation4 + $0x7a8] sm:$0xf0]  ;;  %v3056_v33 = vor.u32 %v3549_v19, %v3053_v20 }
  0xe9   :  { %2026 = vmatpush.bf16.msra.mxu3 %v2984_v59  ;;  %v3069_v59 = vld [vmem:[#allocation4 + $0x648] sm:$0xf0]  ;;  %v3813_v47 = vpop.f32.mrf.mxu2 }
  0xea   :  { %1985 = vmatpush.bf16.msra.mxu0 %v2784_v63  ;;  %v3072_v8 = vor.u32 %v3553_v56, %v3069_v59  ;;  %v1680_v63 = vadd.f32 %v3784_v28, %v1666_v55  ;;  %v3819_v28 = vpop.f32.mrf.mxu1  ;;  %v3579_v55 = vld [vmem:[#allocation4 + $0x714] sm:$0xf] }
  0xeb   :  { %1999 = vmatpush.bf16.msra.mxu1 %v2848_v4  ;;  %v3551_v4 = vld [vmem:[#allocation4 + $0x634] sm:$0xf] }
  0xec   :  { %2013 = vmatpush.bf16.msra.mxu2 %v2912_v58  ;;  %v3061_v58 = vld [vmem:[#allocation4 + $0x638] sm:$0xf0]  ;;  %v1694_v14 = vadd.f32 %v3786_v37, %v1680_v63  ;;  %v3595_v59 = vld [vmem:[#allocation4 + $0x794] sm:$0xf]  ;;  %v3101_v63 = vld [vmem:[#allocation4 + $0x688] sm:$0xf0] }
  0xed   :  { %2027 = vmatpush.bf16.msra.mxu3 %v2976_v10  ;;  %1986 = vmatmul.bf16.vlgmr.msra.gmra.mxu0 %v3748_v31  ;;  %v3208_v31 = vor.u32 %v3587_v49, %v3205_v50  ;;  %v3189_v10 = vld [vmem:[#allocation4 + $0x738] sm:$0xf0]  ;;  %v3064_v13 = vor.u32 %v3551_v4, %v3061_v58  ;;  %v3563_v50 = vld [vmem:[#allocation4 + $0x694] sm:$0xf]  ;;  %v3593_v4 = vld [vmem:[#allocation4 + $0x784] sm:$0xf] }
  0xee   :  { %2034 = vmatpush.bf16.msrb.mxu0 %v3096_v17  ;;  %2000 = vmatmul.bf16.vlgmr.msra.gmra.mxu1 %v3752_v36  ;;  %v3197_v36 = vld [vmem:[#allocation4 + $0x748] sm:$0xf0]  ;;  %v1668_v17 = vadd.f32 %v3795_v57, %v1654_v44  ;;  %v3192_v18 = vor.u32 %v3583_v1, %v3189_v10  ;;  %v3581_v57 = vld [vmem:[#allocation4 + $0x724] sm:$0xf]  ;;  %v1708_v37 = vadd.f32 %v3803_v26, %v1694_v14  ;;  %v3045_v49 = vld [vmem:[#allocation4 + $0x618] sm:$0xf0] }
  0xef   :  { %2048 = vmatpush.bf16.msrb.mxu1 %v3160_v9  ;;  %2014 = vmatmul.bf16.vlgmr.msra.gmra.mxu2 %v3750_v35  ;;  %v3133_v35 = vld [vmem:[#allocation4 + $0x6c8] sm:$0xf0]  ;;  %v3200_v3 = vor.u32 %v3585_v61, %v3197_v36  ;;  %v1709_v9 = vpop.f32.mrf.mxu0  ;;  %v3545_v44 = vld [vmem:[#allocation4 + $0x604] sm:$0xf] }
  0xf0   :  { %2062 = vmatpush.bf16.msrb.mxu2 %v3224_v11  ;;  %2028 = vmatmul.bf16.vlgmr.msra.gmra.mxu3 %v3754_v40  ;;  %v3261_v40 = vld [vmem:[#allocation4 + $0x7c8] sm:$0xf0]  ;;  %v3136_v2 = vor.u32 %v3569_v60, %v3133_v35  ;;  %v3599_v11 = vld [vmem:[#allocation4 + $0x7b4] sm:$0xf]  ;;  %v3237_v60 = vld [vmem:[#allocation4 + $0x798] sm:$0xf0]  ;;  %v1722_v35 = vadd.f32 %v3805_v42, %v1708_v37 }
  0xf1   :  { %2076 = vmatpush.bf16.msrb.mxu3 %v3288_v16  ;;  %v3264_v6 = vor.u32 %v3601_v62, %v3261_v40  ;;  %v3128_v16 = vor.u32 %v3567_v5, %v3125_v52  ;;  %v3256_v23 = vor.u32 %v3599_v11, %v3253_v12  ;;  %v1737_v7 = vpop.f32.mrf.mxu2  ;;  %v3037_v62 = vld [vmem:[#allocation4 + $0x608] sm:$0xf0]  ;;  %v3561_v40 = vld [vmem:[#allocation4 + $0x684] sm:$0xf] }
  0xf2   :  { %2035 = vmatpush.bf16.msrb.mxu0 %v3088_v24  ;;  %v3117_v24 = vld [vmem:[#allocation4 + $0x6a8] sm:$0xf0]  ;;  %v1777_v26 = vpop.f32.mrf.mxu1  ;;  %v3040_v5 = vor.u32 %v3545_v44, %v3037_v62  ;;  %v3104_v42 = vor.u32 %v3561_v40, %v3101_v63  ;;  %v3623_v63 = vld [vmem:[%s3894_s3 + $0x70] sm:$0xff] }
  0xf3   :  { %2049 = vmatpush.bf16.msrb.mxu1 %v3152_v27  ;;  %v1682_v27 = vadd.f32 %v3798_v15, %v1668_v17  ;;  %v3120_v34 = vor.u32 %v3565_v22, %v3117_v24  ;;  %v3229_v58 = vld [vmem:[#allocation4 + $0x788] sm:$0xf0]  ;;  %v3616_v17 = vld [vmem:[%s3894_s3 + $0x38] sm:$0xff] }
  0xf4   :  { %2063 = vmatpush.bf16.msrb.mxu2 %v3216_v29  ;;  %v3597_v29 = vld [vmem:[#allocation4 + $0x7a4] sm:$0xf]  ;;  %v3232_v10 = vor.u32 %v3593_v4, %v3229_v58 }
  0xf5   :  { %2077 = vmatpush.bf16.msrb.mxu3 %v3280_v45  ;;  %v3184_v45 = vor.u32 %v3581_v57, %v3181_v25  ;;  %v3248_v53 = vor.u32 %v3597_v29, %v3245_v30  ;;  %v1696_v15 = vadd.f32 %v3800_v21, %v1682_v27  ;;  %v3577_v21 = vld [vmem:[#allocation4 + $0x704] sm:$0xf]  ;;  %v3612_v27 = vld [vmem:[%s3894_s3 + $0x18] sm:$0xff] }
  0xf6   :  { %2036 = vmatpush.bf16.msrb.mxu0 %v3080_v54  ;;  %v3109_v54 = vld [vmem:[#allocation4 + $0x698] sm:$0xf0] }
  0xf7   :  { %2050 = vmatpush.bf16.msrb.mxu1 %v3144_v39  ;;  %v3173_v39 = vld [vmem:[#allocation4 + $0x718] sm:$0xf0]  ;;  %v1763_v56 = vpop.f32.mrf.mxu0  ;;  %v3112_v61 = vor.u32 %v3563_v50, %v3109_v54 }
  0xf8   :  { %2064 = vmatpush.bf16.msrb.mxu2 %v3208_v31  ;;  %v1751_v31 = vpop.f32.mrf.mxu3  ;;  %v3176_v36 = vor.u32 %v3579_v55, %v3173_v39 }
  0xf9   :  { %2078 = vmatpush.bf16.msrb.mxu3 %v3272_v43  ;;  %v3048_v43 = vor.u32 %v3547_v48, %v3045_v49  ;;  %v1791_v1 = vpop.f32.mrf.mxu2 }
  0xfa   :  { %2037 = vmatpush.bf16.msrb.mxu0 %v3072_v8  ;;  %v3240_v8 = vor.u32 %v3595_v59, %v3237_v60 }
  0xfb   :  { %2051 = vmatpush.bf16.msrb.mxu1 %v3136_v2  ;;  %v3165_v2 = vld [vmem:[#allocation4 + $0x708] sm:$0xf0] }
  0xfc   :  { %2065 = vmatpush.bf16.msrb.mxu2 %v3200_v3  ;;  %v1710_v3 = vadd.f32 %v1709_v9, %v1696_v15  ;;  %v3168_v52 = vor.u32 %v3577_v21, %v3165_v2  ;;  %v359_v21 = vperm.slane %v3791_v51, 1 }
  0xfd   :  { %2079 = vmatpush.bf16.msrb.mxu3 %v3264_v6  ;;  %v1736_v6 = vadd.f32 %v3813_v47, %v1722_v35  ;;  %v1779_v47 = vpop.f32.mrf.mxu1 }
  0xfe   :  { %2038 = vmatpush.bf16.msrb.mxu0 %v3064_v13  ;;  %v1724_v11 = vadd.f32 %v3819_v28, %v1710_v3 }
  0xff   :  { %2052 = vmatpush.bf16.msrb.mxu1 %v3128_v16  ;;  %v1750_v12 = vadd.f32 %v3816_v0, %v1736_v6  ;;  %v1765_v14 = vpop.f32.mrf.mxu0  ;;  %v3615_v16 = vld [vmem:[%s3894_s3 + $0x30] sm:$0xff]  ;;  %v3614_v0 = vld [vmem:[%s3894_s3 + $0x28] sm:$0xff] }
 0x100   :  { %2066 = vmatpush.bf16.msrb.mxu2 %v3192_v18  ;;  %v1805_v9 = vpop.f32.mrf.mxu3  ;;  %v1738_v13 = vadd.f32 %v1737_v7, %v1724_v11 }
 0x101   :  { %2080 = vmatpush.bf16.msrb.mxu3 %v3256_v23  ;;  %v1764_v18 = vadd.f32 %v1763_v56, %v1750_v12  ;;  %v1793_v22 = vpop.f32.mrf.mxu2  ;;  %v3609_v56 = vld [vmem:[%s3894_s3] sm:$0xff] }
 0x102   :  { %2039 = vmatpush.bf16.msrb.mxu0 %v3056_v33  ;;  %v1752_v28 = vadd.f32 %v1751_v31, %v1738_v13  ;;  %v3620_v13 = vld [vmem:[%s3894_s3 + $0x58] sm:$0xff] }
 0x103   :  { %2053 = vmatpush.bf16.msrb.mxu1 %v3120_v34  ;;  %v1778_v19 = vadd.f32 %v1777_v26, %v1764_v18  ;;  %v3619_v18 = vld [vmem:[%s3894_s3 + $0x50] sm:$0xff] }
 0x104   :  { %2067 = vmatpush.bf16.msrb.mxu2 %v3184_v45  ;;  %v1766_v20 = vadd.f32 %v1765_v14, %v1752_v28  ;;  %v3611_v45 = vld [vmem:[%s3894_s3 + $0x10] sm:$0xff] }
 0x105   :  { %2081 = vmatpush.bf16.msrb.mxu3 %v3248_v53  ;;  %v1792_v23 = vadd.f32 %v1791_v1, %v1778_v19  ;;  %v3610_v53 = vld [vmem:[%s3894_s3 + $0x8] sm:$0xff] }
 0x106   :  { %2040 = vmatpush.bf16.msrb.mxu0 %v3048_v43 }
 0x107   :  { %2054 = vmatpush.bf16.msrb.mxu1 %v3112_v61  ;;  %v1806_v25 = vadd.f32 %v1805_v9, %v1792_v23  ;;  %v3618_v23 = vld [vmem:[%s3894_s3 + $0x48] sm:$0xff] }
 0x108   :  { %2068 = vmatpush.bf16.msrb.mxu2 %v3176_v36  ;;  %v1807_v24 = vpop.f32.mrf.mxu3 }
 0x109   :  { %2082 = vmatpush.bf16.msrb.mxu3 %v3240_v8  ;;  %v3624_v8 = vld [vmem:[%s3894_s3 + $0x78] sm:$0xff] }
 0x10a   :  { %2041 = vmatpush.bf16.msrb.mxu0 %v3040_v5  ;;  %v1819_v57 = vpop.f32.mrf.mxu0 }
 0x10b   :  { %2055 = vmatpush.bf16.msrb.mxu1 %v3104_v42  ;;  %v1820_v29 = vadd.f32 %v1819_v57, %v1806_v25  ;;  %v3622_v42 = vld [vmem:[%s3894_s3 + $0x68] sm:$0xff] }
 0x10c   :  { %2069 = vmatpush.bf16.msrb.mxu2 %v3168_v52 }
 0x10d   :  { %2083 = vmatpush.bf16.msrb.mxu3 %v3232_v10  ;;  %2042 = vmatmul.bf16.vlgmr.msrb.gmra.mxu0 %v3760_v32  ;;  %v1833_v32 = vpop.f32.mrf.mxu1  ;;  %v3621_v10 = vld [vmem:[%s3894_s3 + $0x60] sm:$0xff] }
 0x10e   :  { %2228 = vmatpush.bf16.msra.mxu0 %v3616_v17  ;;  %2056 = vmatmul.bf16.vlgmr.msrb.gmra.mxu1 %v3764_v41  ;;  %v1780_v41 = vadd.f32 %v1779_v47, %v1766_v20  ;;  %v1834_v48 = vadd.f32 %v1833_v32, %v1820_v29 }
 0x10f   :  { %2070 = vmatmul.bf16.vlgmr.msrb.gmra.mxu2 %v3762_v38  ;;  %v3613_v38 = vld [vmem:[%s3894_s3 + $0x20] sm:$0xff]  ;;  %2242 = vmatpush.bf16.msra.mxu1 %v3624_v8 }
 0x110   :  { %2084 = vmatmul.bf16.vlgmr.msrb.gmra.mxu3 %v3766_v46  ;;  %v1794_v46 = vadd.f32 %v1793_v22, %v1780_v41 }
 0x112   :  { %2229 = vmatpush.bf16.msra.mxu0 %v3615_v16  ;;  %v1847_v30 = vpop.f32.mrf.mxu2  ;;  %v1808_v33 = vadd.f32 %v1807_v24, %v1794_v46  ;;  %v1821_v37 = vpop.f32.mrf.mxu0 }
 0x113   :  { %v1861_v34 = vpop.f32.mrf.mxu3  ;;  %v1848_v7 = vadd.f32 %v1847_v30, %v1834_v48  ;;  %2243 = vmatpush.bf16.msra.mxu1 %v3623_v63 }
 0x114   :  { %v1822_v49 = vadd.f32 %v1821_v37, %v1808_v33 }
 0x115   :  { %v1835_v50 = vpop.f32.mrf.mxu1  ;;  %v1862_v39 = vadd.f32 %v1861_v34, %v1848_v7 }
 0x116   :  { %2230 = vmatpush.bf16.msra.mxu0 %v3614_v0  ;;  %v1836_v54 = vadd.f32 %v1835_v50, %v1822_v49 }
 0x117   :  { %v2090_v60 = vmax.f32 %v1862_v39, 0.0  ;;  %2244 = vmatpush.bf16.msra.mxu1 %v3622_v42 }
 0x11a   :  { %2231 = vmatpush.bf16.msra.mxu0 %v3613_v38  ;;  %v1849_v55 = vpop.f32.mrf.mxu2  ;;  %v3617_v38 = vld [vmem:[%s3894_s3 + $0x40] sm:$0xff] }
 0x11b   :  { %v1850_v15 = vadd.f32 %v1849_v55, %v1836_v54  ;;  %v1863_v31 = vpop.f32.mrf.mxu3  ;;  %2245 = vmatpush.bf16.msra.mxu1 %v3621_v10 }
 0x11d   :  { %v1864_v59 = vadd.f32 %v1863_v31, %v1850_v15 }
 0x11e   :  { %2232 = vmatpush.bf16.msra.mxu0 %v3612_v27 }
 0x11f   :  { %v2092_v26 = vmax.f32 %v1864_v59, 0.0  ;;  %2246 = vmatpush.bf16.msra.mxu1 %v3620_v13 }
 0x121   :  { %v2094_v43 = vpack.c.bf16 %v2092_v26, %v2090_v60 }
 0x122   :  { %2233 = vmatpush.bf16.msra.mxu0 %v3611_v45 }
 0x123   :  { %2247 = vmatpush.bf16.msra.mxu1 %v3619_v18 }
 0x126   :  { %2234 = vmatpush.bf16.msra.mxu0 %v3610_v53 }
 0x127   :  { %2248 = vmatpush.bf16.msra.mxu1 %v3618_v23 }
 0x12a   :  { %2235 = vmatpush.bf16.msra.mxu0 %v3609_v56  ;;  %v1875_v35 = vpop.f32.mrf.mxu0 }
 0x12b   :  { %v1889_v61 = vpop.f32.mrf.mxu1  ;;  %v1876_v4 = vadd.f32 %v1875_v35, %v359_v21  ;;  %2249 = vmatpush.bf16.msra.mxu1 %v3617_v38 }
 0x12d   :  { %2236 = vmatmul.bf16.vlgmr.msra.gmra.mxu0 %v2094_v43  ;;  %v1890_v6 = vadd.f32 %v1889_v61, %v1876_v4 }
 0x132   :  { %v1903_v36 = vpop.f32.mrf.mxu2  ;;  %v1877_v62 = vpop.f32.mrf.mxu0 }
 0x133   :  { %v1917_v44 = vpop.f32.mrf.mxu3  ;;  %v1891_v40 = vpop.f32.mrf.mxu1  ;;  %v1878_v52 = vadd.f32 %v1877_v62, %v359_v21  ;;  %v1904_v17 = vadd.f32 %v1903_v36, %v1890_v6 }
 0x135   :  { %v1892_v11 = vadd.f32 %v1891_v40, %v1878_v52  ;;  %v1918_v12 = vadd.f32 %v1917_v44, %v1904_v17 }
 0x13a   :  { %v1905_v2 = vpop.f32.mrf.mxu2 }
 0x13b   :  { %v1919_v3 = vpop.f32.mrf.mxu3  ;;  %v1906_v47 = vadd.f32 %v1905_v2, %v1892_v11 }
 0x13d   :  { %v1920_v0 = vadd.f32 %v1919_v3, %v1906_v47 }
 0x14a   :  { %v1931_v58 = vpop.f32.mrf.mxu0 }
 0x14b   :  { %v1945_v5 = vpop.f32.mrf.mxu1  ;;  %v1932_v16 = vadd.f32 %v1931_v58, %v1918_v12 }
 0x14d   :  { %v1946_v22 = vadd.f32 %v1945_v5, %v1932_v16  ;;  %v3630_v5 = vld [vmem:[%s3895_s4] ss:$0 sm:$0xff] }
 0x152   :  { %v1959_v1 = vpop.f32.mrf.mxu2  ;;  %v1933_v9 = vpop.f32.mrf.mxu0 }
 0x153   :  { %v1973_v51 = vpop.f32.mrf.mxu3  ;;  %v1947_v14 = vpop.f32.mrf.mxu1  ;;  %v1934_v57 = vadd.f32 %v1933_v9, %v1920_v0  ;;  %v1960_v32 = vadd.f32 %v1959_v1, %v1946_v22 }
 0x155   :  { %v1948_v25 = vadd.f32 %v1947_v14, %v1934_v57  ;;  %v1974_v27 = vadd.f32 %v1973_v51, %v1960_v32 }
 0x15a   :  { %v1961_v28 = vpop.f32.mrf.mxu2 }
 0x15b   :  { %v1975_v19 = vpop.f32.mrf.mxu3  ;;  %v1962_v29 = vadd.f32 %v1961_v28, %v1948_v25 }
 0x15d   :  { %v1976_v34 = vadd.f32 %v1975_v19, %v1962_v29 }
 0x16a   :  { %v1987_v20 = vpop.f32.mrf.mxu0 }
 0x16b   :  { %v2001_v24 = vpop.f32.mrf.mxu1  ;;  %v1988_v33 = vadd.f32 %v1987_v20, %v1974_v27 }
 0x16d   :  { %v2002_v45 = vadd.f32 %v2001_v24, %v1988_v33 }
 0x172   :  { %v2015_v41 = vpop.f32.mrf.mxu2  ;;  %v1989_v30 = vpop.f32.mrf.mxu0 }
 0x173   :  { %v2029_v46 = vpop.f32.mrf.mxu3  ;;  %v2003_v37 = vpop.f32.mrf.mxu1  ;;  %v1990_v48 = vadd.f32 %v1989_v30, %v1976_v34  ;;  %v2016_v50 = vadd.f32 %v2015_v41, %v2002_v45 }
 0x175   :  { %v2004_v54 = vadd.f32 %v2003_v37, %v1990_v48  ;;  %v2030_v39 = vadd.f32 %v2029_v46, %v2016_v50 }
 0x17a   :  { %v2017_v49 = vpop.f32.mrf.mxu2 }
 0x17b   :  { %v2031_v7 = vpop.f32.mrf.mxu3  ;;  %v2018_v15 = vadd.f32 %v2017_v49, %v2004_v54 }
 0x17d   :  { %v2032_v59 = vadd.f32 %v2031_v7, %v2018_v15 }
 0x18a   :  { %v2043_v53 = vpop.f32.mrf.mxu0 }
 0x18b   :  { %v2057_v55 = vpop.f32.mrf.mxu1  ;;  %v2044_v31 = vadd.f32 %v2043_v53, %v2030_v39 }
 0x18d   :  { %v2058_v43 = vadd.f32 %v2057_v55, %v2044_v31 }
 0x192   :  { %v2071_v56 = vpop.f32.mrf.mxu2  ;;  %v2045_v26 = vpop.f32.mrf.mxu0 }
 0x193   :  { %v2085_v60 = vpop.f32.mrf.mxu3  ;;  %v2046_v35 = vadd.f32 %v2045_v26, %v2032_v59  ;;  %v2072_v61 = vadd.f32 %v2071_v56, %v2058_v43  ;;  %v2059_v36 = vpop.f32.mrf.mxu1 }
 0x195   :  { %v2060_v44 = vadd.f32 %v2059_v36, %v2046_v35  ;;  %v2086_v40 = vadd.f32 %v2085_v60, %v2072_v61 }
 0x197   :  { %v2091_v2 = vmax.f32 %v2086_v40, 0.0 }
 0x19a   :  { %v2073_v62 = vpop.f32.mrf.mxu2 }
 0x19b   :  { %v2074_v8 = vadd.f32 %v2073_v62, %v2060_v44  ;;  %v2087_v63 = vpop.f32.mrf.mxu3 }
 0x19d   :  { %v2088_v21 = vadd.f32 %v2087_v63, %v2074_v8 }
 0x19f   :  { %v2093_v3 = vmax.f32 %v2088_v21, 0.0 }
 0x1a1   :  { %v2095_v4 = vpack.c.bf16 %v2093_v3, %v2091_v2 }
 0x1a3   :  { %2250 = vmatmul.bf16.vlgmr.msra.gmra.mxu1 %v2095_v4 }
 0x1aa   :  { %v2237_v58 = vpop.f32.mrf.mxu0 }
 0x1ab   :  { %v2238_v6 = vadd.f32 %v3630_v5, %v2237_v58 }
 0x1b2   :  { %v2239_v1 = vpop.f32.mrf.mxu0 }
 0x1b3   :  { %v2240_v10 = vadd.f32 %v3630_v5, %v2239_v1 }
 0x220   :  { %v2251_v42 = vpop.f32.mrf.mxu1 }
 0x221   :  { %v2252_v52 = vadd.f32 %v2251_v42, %v2238_v6 }
 0x223   :  { %2257 = vst.msk [vmem:[%s3896_s5] sm:$0xff] %vm2256_vm0, %v2252_v52 }
 0x228   :  { %v2253_v17 = vpop.f32.mrf.mxu1 }
 0x229   :  { %v2254_v51 = vadd.f32 %v2253_v17, %v2240_v10 }
 0x22b   :  { %2258 = vst.msk [vmem:[%s3896_s5 + $0x8] sm:$0xff] %vm2256_vm0, %v2254_v51 }
 0x22c   :  { %2263 = vsyncpa [#allocation3], 1 }
 0x22d   :  { %2264 = vsyncpa [#allocation5], 1 }

</bundles_post_ra>
